<compile_context>
chip_gen: v7x
topology: tpu7x:2x2x1
jax: 0.10.0
libtpu: 0.0.40
codegen_flags: <defaults>
</compile_context>

<pallas_src>
import functools

import jax
import jax.numpy as jnp
from jax import lax
from jax.experimental import pallas as pl
from jax.experimental.pallas import tpu as pltpu

# ----------------------------- problem sizes ------------------------------ #
NUM_CLASSES = 5
INPUT_SIZE = 4
HIDDEN = 32
NUM_LAYERS = 2
SEQ_LEN = 8
BATCH = 2
FC1_DIM = 128


# ------------------------------- kernel ----------------------------------- #
def lstm_kernel(x2d_ref,                     # (T*B, I)   time-major, flattened
                wih0_ref, whh0_ref, b0_ref,  # (I, 4H), (H, 4H), (1, 4H)
                wih1_ref, whh1_ref, b1_ref,  # (H, 4H), (H, 4H), (1, 4H)
                wfc1_ref, bfc1_ref,          # (H, 128), (1, 128)
                wfc2_ref, bfc2_ref,          # (128, C), (1, C)
                out_ref,                     # (L*B, C)
                *, T, B, H):

    def lstm_cell(gates, c):
        # PyTorch gate order along the 4H axis: i, f, g, o.
        i_g = jax.nn.sigmoid(gates[:, 0 * H:1 * H])
        f_g = jax.nn.sigmoid(gates[:, 1 * H:2 * H])
        g_g = jnp.tanh(gates[:, 2 * H:3 * H])
        o_g = jax.nn.sigmoid(gates[:, 3 * H:4 * H])
        c = f_g * c + i_g * g_g
        h = o_g * jnp.tanh(c)
        return h, c

    def run_layer(gx, whh):
        # gx: (T*B, 4H) precomputed input projection (+ bias); whh: (H, 4H).
        h = jnp.zeros((B, H), jnp.float32)
        c = jnp.zeros((B, H), jnp.float32)
        hs = []
        for t in range(T):  # fully unrolled: T is static and tiny
            gates = gx[t * B:(t + 1) * B, :] + jnp.dot(
                h, whh, preferred_element_type=jnp.float32)
            h, c = lstm_cell(gates, c)
            hs.append(h)
        return hs, h

    # ---- layer 0: hoisted input projection (one matmul, bias folded in) ----
    gx0 = (jnp.dot(x2d_ref[...], wih0_ref[...],
                   preferred_element_type=jnp.float32)
           + b0_ref[...])                                     # (T*B, 4H)
    hs0, h_fin0 = run_layer(gx0, whh0_ref[...])

    # ---- layer 1: input projection of layer-0 outputs, kept in registers ----
    seq1 = jnp.concatenate(hs0, axis=0)                       # (T*B, H)
    gx1 = (jnp.dot(seq1, wih1_ref[...],
                   preferred_element_type=jnp.float32)
           + b1_ref[...])                                     # (T*B, 4H)
    _, h_fin1 = run_layer(gx1, whh1_ref[...])

    # hn.view(-1, hidden_size) -> (num_layers * batch, hidden)
    hn = jnp.concatenate([h_fin0, h_fin1], axis=0)            # (L*B, H)

    out = jnp.maximum(hn, 0.0)
    out = jnp.dot(out, wfc1_ref[...],
                  preferred_element_type=jnp.float32) + bfc1_ref[...]
    out = jnp.maximum(out, 0.0)
    out = jnp.dot(out, wfc2_ref[...],
                  preferred_element_type=jnp.float32) + bfc2_ref[...]
    out_ref[...] = out


# ------------------------------- wrapper ----------------------------------- #
def lstm_forward(x, params):
    """x: (B, T, I) batch_first, like the PyTorch module."""
    B, T, I = x.shape
    # Time-major then flatten: row t*B + b corresponds to x[b, t, :].
    x2d = jnp.transpose(x, (1, 0, 2)).reshape(T * B, I)

    args = (x2d,
            params["wih0"], params["whh0"], params["b0"],
            params["wih1"], params["whh1"], params["b1"],
            params["wfc1"], params["bfc1"],
            params["wfc2"], params["bfc2"])

    kernel = functools.partial(lstm_kernel, T=T, B=B, H=HIDDEN)

    vmem = pl.BlockSpec(memory_space=pltpu.MemorySpace.VMEM)
    return pl.pallas_call(
        kernel,
        out_shape=jax.ShapeDtypeStruct((NUM_LAYERS * B, NUM_CLASSES), jnp.float32),
        in_specs=[vmem] * len(args),
        out_specs=vmem,
    )(*args)


# ------------------------- deterministic params ---------------------------- #
def init_params(key):
    k = 1.0 / jnp.sqrt(HIDDEN)
    keys = jax.random.split(key, 16)

    def u(kk, shape):
        return jax.random.uniform(kk, shape, jnp.float32, -k, k)

    # PyTorch nn.LSTM gate order along 4H axis: i, f, g, o.
    # weight_ih_l0: (4H, I) -> pass transposed (I, 4H); same for hh.
    wih0 = u(keys[0], (4 * HIDDEN, INPUT_SIZE)).T
    whh0 = u(keys[1], (4 * HIDDEN, HIDDEN)).T
    b0 = (u(keys[2], (4 * HIDDEN,)) + u(keys[3], (4 * HIDDEN,))).reshape(1, -1)

    wih1 = u(keys[4], (4 * HIDDEN, HIDDEN)).T
    whh1 = u(keys[5], (4 * HIDDEN, HIDDEN)).T
    b1 = (u(keys[6], (4 * HIDDEN,)) + u(keys[7], (4 * HIDDEN,))).reshape(1, -1)

    wfc1 = u(keys[8], (FC1_DIM, HIDDEN)).T          # (H, 128)
    bfc1 = u(keys[9], (FC1_DIM,)).reshape(1, -1)    # (1, 128)
    wfc2 = u(keys[10], (NUM_CLASSES, FC1_DIM)).T    # (128, C)
    bfc2 = u(keys[11], (NUM_CLASSES,)).reshape(1, -1)

    return dict(wih0=wih0, whh0=whh0, b0=b0,
                wih1=wih1, whh1=whh1, b1=b1,
                wfc1=wfc1, bfc1=bfc1, wfc2=wfc2, bfc2=bfc2)


# ----------------------------- pure-JAX reference --------------------------- #
def reference_forward(x, p):
    B = x.shape[0]
    seq = jnp.transpose(x, (1, 0, 2))  # (T, B, I)

    def run_layer(seq_in, wih, whh, b):
        def step(carry, x_t):
            h, c = carry
            gates = x_t @ wih + h @ whh + b[0]
            i_g = jax.nn.sigmoid(gates[:, 0 * HIDDEN:1 * HIDDEN])
            f_g = jax.nn.sigmoid(gates[:, 1 * HIDDEN:2 * HIDDEN])
            g_g = jnp.tanh(gates[:, 2 * HIDDEN:3 * HIDDEN])
            o_g = jax.nn.sigmoid(gates[:, 3 * HIDDEN:4 * HIDDEN])
            c = f_g * c + i_g * g_g
            h = o_g * jnp.tanh(c)
            return (h, c), h

        init = (jnp.zeros((B, HIDDEN), jnp.float32),
                jnp.zeros((B, HIDDEN), jnp.float32))
        (h_f, _), ys = lax.scan(step, init, seq_in)
        return ys, h_f

    seq1, h0f = run_layer(seq, p["wih0"], p["whh0"], p["b0"])
    _, h1f = run_layer(seq1, p["wih1"], p["whh1"], p["b1"])
    hn = jnp.concatenate([h0f, h1f], axis=0)
    out = jnp.maximum(hn, 0.0)
    out = jnp.maximum(out @ p["wfc1"] + p["bfc1"], 0.0)
    return out @ p["wfc2"] + p["bfc2"]


# --------------------------------- main ------------------------------------ #
if __name__ == "__main__":
    key = jax.random.PRNGKey(0)
    k_x, k_p = jax.random.split(key)

    x = jax.random.normal(k_x, (BATCH, SEQ_LEN, INPUT_SIZE), jnp.float32)
    params = init_params(k_p)

    out = lstm_forward(x, params)
    out = jax.block_until_ready(out)

    ref = reference_forward(x, params)
    assert out.shape == (NUM_LAYERS * BATCH, NUM_CLASSES), out.shape
    assert jnp.allclose(out, ref, atol=1e-3, rtol=1e-3), (out, ref)

    print("KERNEL_OK")
</pallas_src>

<mosaic_0001>
module attributes {stable_mosaic.version = 11 : i64} {
  func.func @lstm_kernel(%arg0: memref<16x4xf32, #tpu.memory_space<vmem>>, %arg1: memref<4x128xf32, #tpu.memory_space<vmem>>, %arg2: memref<32x128xf32, #tpu.memory_space<vmem>>, %arg3: memref<1x128xf32, #tpu.memory_space<vmem>>, %arg4: memref<32x128xf32, #tpu.memory_space<vmem>>, %arg5: memref<32x128xf32, #tpu.memory_space<vmem>>, %arg6: memref<1x128xf32, #tpu.memory_space<vmem>>, %arg7: memref<32x128xf32, #tpu.memory_space<vmem>>, %arg8: memref<1x128xf32, #tpu.memory_space<vmem>>, %arg9: memref<128x5xf32, #tpu.memory_space<vmem>>, %arg10: memref<1x5xf32, #tpu.memory_space<vmem>>, %arg11: memref<4x5xf32, #tpu.memory_space<vmem>>) attributes {dimension_semantics = [], scalar_prefetch = 0 : i64, scratch_operands = 0 : i64, tpu.core_type = #tpu.core_type<tc>} {
    %c0 = arith.constant 0 : index
    %c0_0 = arith.constant 0 : index
    %0 = vector.load %arg0[%c0, %c0_0] : memref<16x4xf32, #tpu.memory_space<vmem>>, vector<16x4xf32>
    %c0_1 = arith.constant 0 : index
    %c0_2 = arith.constant 0 : index
    %1 = vector.load %arg1[%c0_1, %c0_2] : memref<4x128xf32, #tpu.memory_space<vmem>>, vector<4x128xf32>
    %cst = arith.constant dense<0.000000e+00> : vector<16x128xf32>
    %2 = tpu.matmul %0, %1, %cst {dimension_numbers = #tpu.dot_dimension_numbers<[1], [0], [0], [1], [0, 0, 1, 1], [], []>} : vector<16x4xf32>, vector<4x128xf32>, vector<16x128xf32> -> vector<16x128xf32>
    %c0_3 = arith.constant 0 : index
    %c0_4 = arith.constant 0 : index
    %3 = vector.load %arg3[%c0_3, %c0_4] : memref<1x128xf32, #tpu.memory_space<vmem>>, vector<1x128xf32>
    %4 = vector.broadcast %3 : vector<1x128xf32> to vector<16x128xf32>
    %5 = arith.addf %2, %4 : vector<16x128xf32>
    %c0_5 = arith.constant 0 : index
    %c0_6 = arith.constant 0 : index
    %6 = vector.load %arg2[%c0_5, %c0_6] : memref<32x128xf32, #tpu.memory_space<vmem>>, vector<32x128xf32>
    %cst_7 = arith.constant 0.000000e+00 : f32
    %7 = vector.broadcast %cst_7 : f32 to vector<2x32xf32>
    %cst_8 = arith.constant 0.000000e+00 : f32
    %8 = vector.broadcast %cst_8 : f32 to vector<2x32xf32>
    %9 = vector.extract_strided_slice %5 {offsets = [0, 0], sizes = [2, 128], strides = [1, 1]} : vector<16x128xf32> to vector<2x128xf32>
    %cst_9 = arith.constant dense<0.000000e+00> : vector<2x128xf32>
    %10 = tpu.matmul %7, %6, %cst_9 {dimension_numbers = #tpu.dot_dimension_numbers<[1], [0], [0], [1], [0, 0, 1, 1], [], []>} : vector<2x32xf32>, vector<32x128xf32>, vector<2x128xf32> -> vector<2x128xf32>
    %11 = arith.addf %9, %10 : vector<2x128xf32>
    %12 = vector.extract_strided_slice %11 {offsets = [0, 0], sizes = [2, 32], strides = [1, 1]} : vector<2x128xf32> to vector<2x32xf32>
    %13 = arith.negf %12 : vector<2x32xf32>
    %14 = math.exp %13 : vector<2x32xf32>
    %cst_10 = arith.constant 1.000000e+00 : f32
    %15 = vector.broadcast %cst_10 : f32 to vector<2x32xf32>
    %16 = arith.addf %15, %14 : vector<2x32xf32>
    %17 = arith.divf %15, %16 : vector<2x32xf32>
    %18 = vector.extract_strided_slice %11 {offsets = [0, 32], sizes = [2, 32], strides = [1, 1]} : vector<2x128xf32> to vector<2x32xf32>
    %19 = arith.negf %18 : vector<2x32xf32>
    %20 = math.exp %19 : vector<2x32xf32>
    %cst_11 = arith.constant 1.000000e+00 : f32
    %21 = vector.broadcast %cst_11 : f32 to vector<2x32xf32>
    %22 = arith.addf %21, %20 : vector<2x32xf32>
    %23 = arith.divf %21, %22 : vector<2x32xf32>
    %24 = vector.extract_strided_slice %11 {offsets = [0, 64], sizes = [2, 32], strides = [1, 1]} : vector<2x128xf32> to vector<2x32xf32>
    %25 = math.tanh %24 : vector<2x32xf32>
    %26 = vector.extract_strided_slice %11 {offsets = [0, 96], sizes = [2, 32], strides = [1, 1]} : vector<2x128xf32> to vector<2x32xf32>
    %27 = arith.negf %26 : vector<2x32xf32>
    %28 = math.exp %27 : vector<2x32xf32>
    %cst_12 = arith.constant 1.000000e+00 : f32
    %29 = vector.broadcast %cst_12 : f32 to vector<2x32xf32>
    %30 = arith.addf %29, %28 : vector<2x32xf32>
    %31 = arith.divf %29, %30 : vector<2x32xf32>
    %32 = arith.mulf %23, %8 : vector<2x32xf32>
    %33 = arith.mulf %17, %25 : vector<2x32xf32>
    %34 = arith.addf %32, %33 : vector<2x32xf32>
    %35 = math.tanh %34 : vector<2x32xf32>
    %36 = arith.mulf %31, %35 : vector<2x32xf32>
    %37 = vector.extract_strided_slice %5 {offsets = [2, 0], sizes = [2, 128], strides = [1, 1]} : vector<16x128xf32> to vector<2x128xf32>
    %cst_13 = arith.constant dense<0.000000e+00> : vector<2x128xf32>
    %38 = tpu.matmul %36, %6, %cst_13 {dimension_numbers = #tpu.dot_dimension_numbers<[1], [0], [0], [1], [0, 0, 1, 1], [], []>} : vector<2x32xf32>, vector<32x128xf32>, vector<2x128xf32> -> vector<2x128xf32>
    %39 = arith.addf %37, %38 : vector<2x128xf32>
    %40 = vector.extract_strided_slice %39 {offsets = [0, 0], sizes = [2, 32], strides = [1, 1]} : vector<2x128xf32> to vector<2x32xf32>
    %41 = arith.negf %40 : vector<2x32xf32>
    %42 = math.exp %41 : vector<2x32xf32>
    %cst_14 = arith.constant 1.000000e+00 : f32
    %43 = vector.broadcast %cst_14 : f32 to vector<2x32xf32>
    %44 = arith.addf %43, %42 : vector<2x32xf32>
    %45 = arith.divf %43, %44 : vector<2x32xf32>
    %46 = vector.extract_strided_slice %39 {offsets = [0, 32], sizes = [2, 32], strides = [1, 1]} : vector<2x128xf32> to vector<2x32xf32>
    %47 = arith.negf %46 : vector<2x32xf32>
    %48 = math.exp %47 : vector<2x32xf32>
    %cst_15 = arith.constant 1.000000e+00 : f32
    %49 = vector.broadcast %cst_15 : f32 to vector<2x32xf32>
    %50 = arith.addf %49, %48 : vector<2x32xf32>
    %51 = arith.divf %49, %50 : vector<2x32xf32>
    %52 = vector.extract_strided_slice %39 {offsets = [0, 64], sizes = [2, 32], strides = [1, 1]} : vector<2x128xf32> to vector<2x32xf32>
    %53 = math.tanh %52 : vector<2x32xf32>
    %54 = vector.extract_strided_slice %39 {offsets = [0, 96], sizes = [2, 32], strides = [1, 1]} : vector<2x128xf32> to vector<2x32xf32>
    %55 = arith.negf %54 : vector<2x32xf32>
    %56 = math.exp %55 : vector<2x32xf32>
    %cst_16 = arith.constant 1.000000e+00 : f32
    %57 = vector.broadcast %cst_16 : f32 to vector<2x32xf32>
    %58 = arith.addf %57, %56 : vector<2x32xf32>
    %59 = arith.divf %57, %58 : vector<2x32xf32>
    %60 = arith.mulf %51, %34 : vector<2x32xf32>
    %61 = arith.mulf %45, %53 : vector<2x32xf32>
    %62 = arith.addf %60, %61 : vector<2x32xf32>
    %63 = math.tanh %62 : vector<2x32xf32>
    %64 = arith.mulf %59, %63 : vector<2x32xf32>
    %65 = vector.extract_strided_slice %5 {offsets = [4, 0], sizes = [2, 128], strides = [1, 1]} : vector<16x128xf32> to vector<2x128xf32>
    %cst_17 = arith.constant dense<0.000000e+00> : vector<2x128xf32>
    %66 = tpu.matmul %64, %6, %cst_17 {dimension_numbers = #tpu.dot_dimension_numbers<[1], [0], [0], [1], [0, 0, 1, 1], [], []>} : vector<2x32xf32>, vector<32x128xf32>, vector<2x128xf32> -> vector<2x128xf32>
    %67 = arith.addf %65, %66 : vector<2x128xf32>
    %68 = vector.extract_strided_slice %67 {offsets = [0, 0], sizes = [2, 32], strides = [1, 1]} : vector<2x128xf32> to vector<2x32xf32>
    %69 = arith.negf %68 : vector<2x32xf32>
    %70 = math.exp %69 : vector<2x32xf32>
    %cst_18 = arith.constant 1.000000e+00 : f32
    %71 = vector.broadcast %cst_18 : f32 to vector<2x32xf32>
    %72 = arith.addf %71, %70 : vector<2x32xf32>
    %73 = arith.divf %71, %72 : vector<2x32xf32>
    %74 = vector.extract_strided_slice %67 {offsets = [0, 32], sizes = [2, 32], strides = [1, 1]} : vector<2x128xf32> to vector<2x32xf32>
    %75 = arith.negf %74 : vector<2x32xf32>
    %76 = math.exp %75 : vector<2x32xf32>
    %cst_19 = arith.constant 1.000000e+00 : f32
    %77 = vector.broadcast %cst_19 : f32 to vector<2x32xf32>
    %78 = arith.addf %77, %76 : vector<2x32xf32>
    %79 = arith.divf %77, %78 : vector<2x32xf32>
    %80 = vector.extract_strided_slice %67 {offsets = [0, 64], sizes = [2, 32], strides = [1, 1]} : vector<2x128xf32> to vector<2x32xf32>
    %81 = math.tanh %80 : vector<2x32xf32>
    %82 = vector.extract_strided_slice %67 {offsets = [0, 96], sizes = [2, 32], strides = [1, 1]} : vector<2x128xf32> to vector<2x32xf32>
    %83 = arith.negf %82 : vector<2x32xf32>
    %84 = math.exp %83 : vector<2x32xf32>
    %cst_20 = arith.constant 1.000000e+00 : f32
    %85 = vector.broadcast %cst_20 : f32 to vector<2x32xf32>
    %86 = arith.addf %85, %84 : vector<2x32xf32>
    %87 = arith.divf %85, %86 : vector<2x32xf32>
    %88 = arith.mulf %79, %62 : vector<2x32xf32>
    %89 = arith.mulf %73, %81 : vector<2x32xf32>
    %90 = arith.addf %88, %89 : vector<2x32xf32>
    %91 = math.tanh %90 : vector<2x32xf32>
    %92 = arith.mulf %87, %91 : vector<2x32xf32>
    %93 = vector.extract_strided_slice %5 {offsets = [6, 0], sizes = [2, 128], strides = [1, 1]} : vector<16x128xf32> to vector<2x128xf32>
    %cst_21 = arith.constant dense<0.000000e+00> : vector<2x128xf32>
    %94 = tpu.matmul %92, %6, %cst_21 {dimension_numbers = #tpu.dot_dimension_numbers<[1], [0], [0], [1], [0, 0, 1, 1], [], []>} : vector<2x32xf32>, vector<32x128xf32>, vector<2x128xf32> -> vector<2x128xf32>
    %95 = arith.addf %93, %94 : vector<2x128xf32>
    %96 = vector.extract_strided_slice %95 {offsets = [0, 0], sizes = [2, 32], strides = [1, 1]} : vector<2x128xf32> to vector<2x32xf32>
    %97 = arith.negf %96 : vector<2x32xf32>
    %98 = math.exp %97 : vector<2x32xf32>
    %cst_22 = arith.constant 1.000000e+00 : f32
    %99 = vector.broadcast %cst_22 : f32 to vector<2x32xf32>
    %100 = arith.addf %99, %98 : vector<2x32xf32>
    %101 = arith.divf %99, %100 : vector<2x32xf32>
    %102 = vector.extract_strided_slice %95 {offsets = [0, 32], sizes = [2, 32], strides = [1, 1]} : vector<2x128xf32> to vector<2x32xf32>
    %103 = arith.negf %102 : vector<2x32xf32>
    %104 = math.exp %103 : vector<2x32xf32>
    %cst_23 = arith.constant 1.000000e+00 : f32
    %105 = vector.broadcast %cst_23 : f32 to vector<2x32xf32>
    %106 = arith.addf %105, %104 : vector<2x32xf32>
    %107 = arith.divf %105, %106 : vector<2x32xf32>
    %108 = vector.extract_strided_slice %95 {offsets = [0, 64], sizes = [2, 32], strides = [1, 1]} : vector<2x128xf32> to vector<2x32xf32>
    %109 = math.tanh %108 : vector<2x32xf32>
    %110 = vector.extract_strided_slice %95 {offsets = [0, 96], sizes = [2, 32], strides = [1, 1]} : vector<2x128xf32> to vector<2x32xf32>
    %111 = arith.negf %110 : vector<2x32xf32>
    %112 = math.exp %111 : vector<2x32xf32>
    %cst_24 = arith.constant 1.000000e+00 : f32
    %113 = vector.broadcast %cst_24 : f32 to vector<2x32xf32>
    %114 = arith.addf %113, %112 : vector<2x32xf32>
    %115 = arith.divf %113, %114 : vector<2x32xf32>
    %116 = arith.mulf %107, %90 : vector<2x32xf32>
    %117 = arith.mulf %101, %109 : vector<2x32xf32>
    %118 = arith.addf %116, %117 : vector<2x32xf32>
    %119 = math.tanh %118 : vector<2x32xf32>
    %120 = arith.mulf %115, %119 : vector<2x32xf32>
    %121 = vector.extract_strided_slice %5 {offsets = [8, 0], sizes = [2, 128], strides = [1, 1]} : vector<16x128xf32> to vector<2x128xf32>
    %cst_25 = arith.constant dense<0.000000e+00> : vector<2x128xf32>
    %122 = tpu.matmul %120, %6, %cst_25 {dimension_numbers = #tpu.dot_dimension_numbers<[1], [0], [0], [1], [0, 0, 1, 1], [], []>} : vector<2x32xf32>, vector<32x128xf32>, vector<2x128xf32> -> vector<2x128xf32>
    %123 = arith.addf %121, %122 : vector<2x128xf32>
    %124 = vector.extract_strided_slice %123 {offsets = [0, 0], sizes = [2, 32], strides = [1, 1]} : vector<2x128xf32> to vector<2x32xf32>
    %125 = arith.negf %124 : vector<2x32xf32>
    %126 = math.exp %125 : vector<2x32xf32>
    %cst_26 = arith.constant 1.000000e+00 : f32
    %127 = vector.broadcast %cst_26 : f32 to vector<2x32xf32>
    %128 = arith.addf %127, %126 : vector<2x32xf32>
    %129 = arith.divf %127, %128 : vector<2x32xf32>
    %130 = vector.extract_strided_slice %123 {offsets = [0, 32], sizes = [2, 32], strides = [1, 1]} : vector<2x128xf32> to vector<2x32xf32>
    %131 = arith.negf %130 : vector<2x32xf32>
    %132 = math.exp %131 : vector<2x32xf32>
    %cst_27 = arith.constant 1.000000e+00 : f32
    %133 = vector.broadcast %cst_27 : f32 to vector<2x32xf32>
    %134 = arith.addf %133, %132 : vector<2x32xf32>
    %135 = arith.divf %133, %134 : vector<2x32xf32>
    %136 = vector.extract_strided_slice %123 {offsets = [0, 64], sizes = [2, 32], strides = [1, 1]} : vector<2x128xf32> to vector<2x32xf32>
    %137 = math.tanh %136 : vector<2x32xf32>
    %138 = vector.extract_strided_slice %123 {offsets = [0, 96], sizes = [2, 32], strides = [1, 1]} : vector<2x128xf32> to vector<2x32xf32>
    %139 = arith.negf %138 : vector<2x32xf32>
    %140 = math.exp %139 : vector<2x32xf32>
    %cst_28 = arith.constant 1.000000e+00 : f32
    %141 = vector.broadcast %cst_28 : f32 to vector<2x32xf32>
    %142 = arith.addf %141, %140 : vector<2x32xf32>
    %143 = arith.divf %141, %142 : vector<2x32xf32>
    %144 = arith.mulf %135, %118 : vector<2x32xf32>
    %145 = arith.mulf %129, %137 : vector<2x32xf32>
    %146 = arith.addf %144, %145 : vector<2x32xf32>
    %147 = math.tanh %146 : vector<2x32xf32>
    %148 = arith.mulf %143, %147 : vector<2x32xf32>
    %149 = vector.extract_strided_slice %5 {offsets = [10, 0], sizes = [2, 128], strides = [1, 1]} : vector<16x128xf32> to vector<2x128xf32>
    %cst_29 = arith.constant dense<0.000000e+00> : vector<2x128xf32>
    %150 = tpu.matmul %148, %6, %cst_29 {dimension_numbers = #tpu.dot_dimension_numbers<[1], [0], [0], [1], [0, 0, 1, 1], [], []>} : vector<2x32xf32>, vector<32x128xf32>, vector<2x128xf32> -> vector<2x128xf32>
    %151 = arith.addf %149, %150 : vector<2x128xf32>
    %152 = vector.extract_strided_slice %151 {offsets = [0, 0], sizes = [2, 32], strides = [1, 1]} : vector<2x128xf32> to vector<2x32xf32>
    %153 = arith.negf %152 : vector<2x32xf32>
    %154 = math.exp %153 : vector<2x32xf32>
    %cst_30 = arith.constant 1.000000e+00 : f32
    %155 = vector.broadcast %cst_30 : f32 to vector<2x32xf32>
    %156 = arith.addf %155, %154 : vector<2x32xf32>
    %157 = arith.divf %155, %156 : vector<2x32xf32>
    %158 = vector.extract_strided_slice %151 {offsets = [0, 32], sizes = [2, 32], strides = [1, 1]} : vector<2x128xf32> to vector<2x32xf32>
    %159 = arith.negf %158 : vector<2x32xf32>
    %160 = math.exp %159 : vector<2x32xf32>
    %cst_31 = arith.constant 1.000000e+00 : f32
    %161 = vector.broadcast %cst_31 : f32 to vector<2x32xf32>
    %162 = arith.addf %161, %160 : vector<2x32xf32>
    %163 = arith.divf %161, %162 : vector<2x32xf32>
    %164 = vector.extract_strided_slice %151 {offsets = [0, 64], sizes = [2, 32], strides = [1, 1]} : vector<2x128xf32> to vector<2x32xf32>
    %165 = math.tanh %164 : vector<2x32xf32>
    %166 = vector.extract_strided_slice %151 {offsets = [0, 96], sizes = [2, 32], strides = [1, 1]} : vector<2x128xf32> to vector<2x32xf32>
    %167 = arith.negf %166 : vector<2x32xf32>
    %168 = math.exp %167 : vector<2x32xf32>
    %cst_32 = arith.constant 1.000000e+00 : f32
    %169 = vector.broadcast %cst_32 : f32 to vector<2x32xf32>
    %170 = arith.addf %169, %168 : vector<2x32xf32>
    %171 = arith.divf %169, %170 : vector<2x32xf32>
    %172 = arith.mulf %163, %146 : vector<2x32xf32>
    %173 = arith.mulf %157, %165 : vector<2x32xf32>
    %174 = arith.addf %172, %173 : vector<2x32xf32>
    %175 = math.tanh %174 : vector<2x32xf32>
    %176 = arith.mulf %171, %175 : vector<2x32xf32>
    %177 = vector.extract_strided_slice %5 {offsets = [12, 0], sizes = [2, 128], strides = [1, 1]} : vector<16x128xf32> to vector<2x128xf32>
    %cst_33 = arith.constant dense<0.000000e+00> : vector<2x128xf32>
    %178 = tpu.matmul %176, %6, %cst_33 {dimension_numbers = #tpu.dot_dimension_numbers<[1], [0], [0], [1], [0, 0, 1, 1], [], []>} : vector<2x32xf32>, vector<32x128xf32>, vector<2x128xf32> -> vector<2x128xf32>
    %179 = arith.addf %177, %178 : vector<2x128xf32>
    %180 = vector.extract_strided_slice %179 {offsets = [0, 0], sizes = [2, 32], strides = [1, 1]} : vector<2x128xf32> to vector<2x32xf32>
    %181 = arith.negf %180 : vector<2x32xf32>
    %182 = math.exp %181 : vector<2x32xf32>
    %cst_34 = arith.constant 1.000000e+00 : f32
    %183 = vector.broadcast %cst_34 : f32 to vector<2x32xf32>
    %184 = arith.addf %183, %182 : vector<2x32xf32>
    %185 = arith.divf %183, %184 : vector<2x32xf32>
    %186 = vector.extract_strided_slice %179 {offsets = [0, 32], sizes = [2, 32], strides = [1, 1]} : vector<2x128xf32> to vector<2x32xf32>
    %187 = arith.negf %186 : vector<2x32xf32>
    %188 = math.exp %187 : vector<2x32xf32>
    %cst_35 = arith.constant 1.000000e+00 : f32
    %189 = vector.broadcast %cst_35 : f32 to vector<2x32xf32>
    %190 = arith.addf %189, %188 : vector<2x32xf32>
    %191 = arith.divf %189, %190 : vector<2x32xf32>
    %192 = vector.extract_strided_slice %179 {offsets = [0, 64], sizes = [2, 32], strides = [1, 1]} : vector<2x128xf32> to vector<2x32xf32>
    %193 = math.tanh %192 : vector<2x32xf32>
    %194 = vector.extract_strided_slice %179 {offsets = [0, 96], sizes = [2, 32], strides = [1, 1]} : vector<2x128xf32> to vector<2x32xf32>
    %195 = arith.negf %194 : vector<2x32xf32>
    %196 = math.exp %195 : vector<2x32xf32>
    %cst_36 = arith.constant 1.000000e+00 : f32
    %197 = vector.broadcast %cst_36 : f32 to vector<2x32xf32>
    %198 = arith.addf %197, %196 : vector<2x32xf32>
    %199 = arith.divf %197, %198 : vector<2x32xf32>
    %200 = arith.mulf %191, %174 : vector<2x32xf32>
    %201 = arith.mulf %185, %193 : vector<2x32xf32>
    %202 = arith.addf %200, %201 : vector<2x32xf32>
    %203 = math.tanh %202 : vector<2x32xf32>
    %204 = arith.mulf %199, %203 : vector<2x32xf32>
    %205 = vector.extract_strided_slice %5 {offsets = [14, 0], sizes = [2, 128], strides = [1, 1]} : vector<16x128xf32> to vector<2x128xf32>
    %cst_37 = arith.constant dense<0.000000e+00> : vector<2x128xf32>
    %206 = tpu.matmul %204, %6, %cst_37 {dimension_numbers = #tpu.dot_dimension_numbers<[1], [0], [0], [1], [0, 0, 1, 1], [], []>} : vector<2x32xf32>, vector<32x128xf32>, vector<2x128xf32> -> vector<2x128xf32>
    %207 = arith.addf %205, %206 : vector<2x128xf32>
    %208 = vector.extract_strided_slice %207 {offsets = [0, 0], sizes = [2, 32], strides = [1, 1]} : vector<2x128xf32> to vector<2x32xf32>
    %209 = arith.negf %208 : vector<2x32xf32>
    %210 = math.exp %209 : vector<2x32xf32>
    %cst_38 = arith.constant 1.000000e+00 : f32
    %211 = vector.broadcast %cst_38 : f32 to vector<2x32xf32>
    %212 = arith.addf %211, %210 : vector<2x32xf32>
    %213 = arith.divf %211, %212 : vector<2x32xf32>
    %214 = vector.extract_strided_slice %207 {offsets = [0, 32], sizes = [2, 32], strides = [1, 1]} : vector<2x128xf32> to vector<2x32xf32>
    %215 = arith.negf %214 : vector<2x32xf32>
    %216 = math.exp %215 : vector<2x32xf32>
    %cst_39 = arith.constant 1.000000e+00 : f32
    %217 = vector.broadcast %cst_39 : f32 to vector<2x32xf32>
    %218 = arith.addf %217, %216 : vector<2x32xf32>
    %219 = arith.divf %217, %218 : vector<2x32xf32>
    %220 = vector.extract_strided_slice %207 {offsets = [0, 64], sizes = [2, 32], strides = [1, 1]} : vector<2x128xf32> to vector<2x32xf32>
    %221 = math.tanh %220 : vector<2x32xf32>
    %222 = vector.extract_strided_slice %207 {offsets = [0, 96], sizes = [2, 32], strides = [1, 1]} : vector<2x128xf32> to vector<2x32xf32>
    %223 = arith.negf %222 : vector<2x32xf32>
    %224 = math.exp %223 : vector<2x32xf32>
    %cst_40 = arith.constant 1.000000e+00 : f32
    %225 = vector.broadcast %cst_40 : f32 to vector<2x32xf32>
    %226 = arith.addf %225, %224 : vector<2x32xf32>
    %227 = arith.divf %225, %226 : vector<2x32xf32>
    %228 = arith.mulf %219, %202 : vector<2x32xf32>
    %229 = arith.mulf %213, %221 : vector<2x32xf32>
    %230 = arith.addf %228, %229 : vector<2x32xf32>
    %231 = math.tanh %230 : vector<2x32xf32>
    %232 = arith.mulf %227, %231 : vector<2x32xf32>
    %233 = tpu.concatenate %36, %64, %92, %120, %148, %176, %204, %232 in 0 : vector<2x32xf32>, vector<2x32xf32>, vector<2x32xf32>, vector<2x32xf32>, vector<2x32xf32>, vector<2x32xf32>, vector<2x32xf32>, vector<2x32xf32> -> vector<16x32xf32>
    %c0_41 = arith.constant 0 : index
    %c0_42 = arith.constant 0 : index
    %234 = vector.load %arg4[%c0_41, %c0_42] : memref<32x128xf32, #tpu.memory_space<vmem>>, vector<32x128xf32>
    %cst_43 = arith.constant dense<0.000000e+00> : vector<16x128xf32>
    %235 = tpu.matmul %233, %234, %cst_43 {dimension_numbers = #tpu.dot_dimension_numbers<[1], [0], [0], [1], [0, 0, 1, 1], [], []>} : vector<16x32xf32>, vector<32x128xf32>, vector<16x128xf32> -> vector<16x128xf32>
    %c0_44 = arith.constant 0 : index
    %c0_45 = arith.constant 0 : index
    %236 = vector.load %arg6[%c0_44, %c0_45] : memref<1x128xf32, #tpu.memory_space<vmem>>, vector<1x128xf32>
    %237 = vector.broadcast %236 : vector<1x128xf32> to vector<16x128xf32>
    %238 = arith.addf %235, %237 : vector<16x128xf32>
    %c0_46 = arith.constant 0 : index
    %c0_47 = arith.constant 0 : index
    %239 = vector.load %arg5[%c0_46, %c0_47] : memref<32x128xf32, #tpu.memory_space<vmem>>, vector<32x128xf32>
    %cst_48 = arith.constant 0.000000e+00 : f32
    %240 = vector.broadcast %cst_48 : f32 to vector<2x32xf32>
    %cst_49 = arith.constant 0.000000e+00 : f32
    %241 = vector.broadcast %cst_49 : f32 to vector<2x32xf32>
    %242 = vector.extract_strided_slice %238 {offsets = [0, 0], sizes = [2, 128], strides = [1, 1]} : vector<16x128xf32> to vector<2x128xf32>
    %cst_50 = arith.constant dense<0.000000e+00> : vector<2x128xf32>
    %243 = tpu.matmul %240, %239, %cst_50 {dimension_numbers = #tpu.dot_dimension_numbers<[1], [0], [0], [1], [0, 0, 1, 1], [], []>} : vector<2x32xf32>, vector<32x128xf32>, vector<2x128xf32> -> vector<2x128xf32>
    %244 = arith.addf %242, %243 : vector<2x128xf32>
    %245 = vector.extract_strided_slice %244 {offsets = [0, 0], sizes = [2, 32], strides = [1, 1]} : vector<2x128xf32> to vector<2x32xf32>
    %246 = arith.negf %245 : vector<2x32xf32>
    %247 = math.exp %246 : vector<2x32xf32>
    %cst_51 = arith.constant 1.000000e+00 : f32
    %248 = vector.broadcast %cst_51 : f32 to vector<2x32xf32>
    %249 = arith.addf %248, %247 : vector<2x32xf32>
    %250 = arith.divf %248, %249 : vector<2x32xf32>
    %251 = vector.extract_strided_slice %244 {offsets = [0, 32], sizes = [2, 32], strides = [1, 1]} : vector<2x128xf32> to vector<2x32xf32>
    %252 = arith.negf %251 : vector<2x32xf32>
    %253 = math.exp %252 : vector<2x32xf32>
    %cst_52 = arith.constant 1.000000e+00 : f32
    %254 = vector.broadcast %cst_52 : f32 to vector<2x32xf32>
    %255 = arith.addf %254, %253 : vector<2x32xf32>
    %256 = arith.divf %254, %255 : vector<2x32xf32>
    %257 = vector.extract_strided_slice %244 {offsets = [0, 64], sizes = [2, 32], strides = [1, 1]} : vector<2x128xf32> to vector<2x32xf32>
    %258 = math.tanh %257 : vector<2x32xf32>
    %259 = vector.extract_strided_slice %244 {offsets = [0, 96], sizes = [2, 32], strides = [1, 1]} : vector<2x128xf32> to vector<2x32xf32>
    %260 = arith.negf %259 : vector<2x32xf32>
    %261 = math.exp %260 : vector<2x32xf32>
    %cst_53 = arith.constant 1.000000e+00 : f32
    %262 = vector.broadcast %cst_53 : f32 to vector<2x32xf32>
    %263 = arith.addf %262, %261 : vector<2x32xf32>
    %264 = arith.divf %262, %263 : vector<2x32xf32>
    %265 = arith.mulf %256, %241 : vector<2x32xf32>
    %266 = arith.mulf %250, %258 : vector<2x32xf32>
    %267 = arith.addf %265, %266 : vector<2x32xf32>
    %268 = math.tanh %267 : vector<2x32xf32>
    %269 = arith.mulf %264, %268 : vector<2x32xf32>
    %270 = vector.extract_strided_slice %238 {offsets = [2, 0], sizes = [2, 128], strides = [1, 1]} : vector<16x128xf32> to vector<2x128xf32>
    %cst_54 = arith.constant dense<0.000000e+00> : vector<2x128xf32>
    %271 = tpu.matmul %269, %239, %cst_54 {dimension_numbers = #tpu.dot_dimension_numbers<[1], [0], [0], [1], [0, 0, 1, 1], [], []>} : vector<2x32xf32>, vector<32x128xf32>, vector<2x128xf32> -> vector<2x128xf32>
    %272 = arith.addf %270, %271 : vector<2x128xf32>
    %273 = vector.extract_strided_slice %272 {offsets = [0, 0], sizes = [2, 32], strides = [1, 1]} : vector<2x128xf32> to vector<2x32xf32>
    %274 = arith.negf %273 : vector<2x32xf32>
    %275 = math.exp %274 : vector<2x32xf32>
    %cst_55 = arith.constant 1.000000e+00 : f32
    %276 = vector.broadcast %cst_55 : f32 to vector<2x32xf32>
    %277 = arith.addf %276, %275 : vector<2x32xf32>
    %278 = arith.divf %276, %277 : vector<2x32xf32>
    %279 = vector.extract_strided_slice %272 {offsets = [0, 32], sizes = [2, 32], strides = [1, 1]} : vector<2x128xf32> to vector<2x32xf32>
    %280 = arith.negf %279 : vector<2x32xf32>
    %281 = math.exp %280 : vector<2x32xf32>
    %cst_56 = arith.constant 1.000000e+00 : f32
    %282 = vector.broadcast %cst_56 : f32 to vector<2x32xf32>
    %283 = arith.addf %282, %281 : vector<2x32xf32>
    %284 = arith.divf %282, %283 : vector<2x32xf32>
    %285 = vector.extract_strided_slice %272 {offsets = [0, 64], sizes = [2, 32], strides = [1, 1]} : vector<2x128xf32> to vector<2x32xf32>
    %286 = math.tanh %285 : vector<2x32xf32>
    %287 = vector.extract_strided_slice %272 {offsets = [0, 96], sizes = [2, 32], strides = [1, 1]} : vector<2x128xf32> to vector<2x32xf32>
    %288 = arith.negf %287 : vector<2x32xf32>
    %289 = math.exp %288 : vector<2x32xf32>
    %cst_57 = arith.constant 1.000000e+00 : f32
    %290 = vector.broadcast %cst_57 : f32 to vector<2x32xf32>
    %291 = arith.addf %290, %289 : vector<2x32xf32>
    %292 = arith.divf %290, %291 : vector<2x32xf32>
    %293 = arith.mulf %284, %267 : vector<2x32xf32>
    %294 = arith.mulf %278, %286 : vector<2x32xf32>
    %295 = arith.addf %293, %294 : vector<2x32xf32>
    %296 = math.tanh %295 : vector<2x32xf32>
    %297 = arith.mulf %292, %296 : vector<2x32xf32>
    %298 = vector.extract_strided_slice %238 {offsets = [4, 0], sizes = [2, 128], strides = [1, 1]} : vector<16x128xf32> to vector<2x128xf32>
    %cst_58 = arith.constant dense<0.000000e+00> : vector<2x128xf32>
    %299 = tpu.matmul %297, %239, %cst_58 {dimension_numbers = #tpu.dot_dimension_numbers<[1], [0], [0], [1], [0, 0, 1, 1], [], []>} : vector<2x32xf32>, vector<32x128xf32>, vector<2x128xf32> -> vector<2x128xf32>
    %300 = arith.addf %298, %299 : vector<2x128xf32>
    %301 = vector.extract_strided_slice %300 {offsets = [0, 0], sizes = [2, 32], strides = [1, 1]} : vector<2x128xf32> to vector<2x32xf32>
    %302 = arith.negf %301 : vector<2x32xf32>
    %303 = math.exp %302 : vector<2x32xf32>
    %cst_59 = arith.constant 1.000000e+00 : f32
    %304 = vector.broadcast %cst_59 : f32 to vector<2x32xf32>
    %305 = arith.addf %304, %303 : vector<2x32xf32>
    %306 = arith.divf %304, %305 : vector<2x32xf32>
    %307 = vector.extract_strided_slice %300 {offsets = [0, 32], sizes = [2, 32], strides = [1, 1]} : vector<2x128xf32> to vector<2x32xf32>
    %308 = arith.negf %307 : vector<2x32xf32>
    %309 = math.exp %308 : vector<2x32xf32>
    %cst_60 = arith.constant 1.000000e+00 : f32
    %310 = vector.broadcast %cst_60 : f32 to vector<2x32xf32>
    %311 = arith.addf %310, %309 : vector<2x32xf32>
    %312 = arith.divf %310, %311 : vector<2x32xf32>
    %313 = vector.extract_strided_slice %300 {offsets = [0, 64], sizes = [2, 32], strides = [1, 1]} : vector<2x128xf32> to vector<2x32xf32>
    %314 = math.tanh %313 : vector<2x32xf32>
    %315 = vector.extract_strided_slice %300 {offsets = [0, 96], sizes = [2, 32], strides = [1, 1]} : vector<2x128xf32> to vector<2x32xf32>
    %316 = arith.negf %315 : vector<2x32xf32>
    %317 = math.exp %316 : vector<2x32xf32>
    %cst_61 = arith.constant 1.000000e+00 : f32
    %318 = vector.broadcast %cst_61 : f32 to vector<2x32xf32>
    %319 = arith.addf %318, %317 : vector<2x32xf32>
    %320 = arith.divf %318, %319 : vector<2x32xf32>
    %321 = arith.mulf %312, %295 : vector<2x32xf32>
    %322 = arith.mulf %306, %314 : vector<2x32xf32>
    %323 = arith.addf %321, %322 : vector<2x32xf32>
    %324 = math.tanh %323 : vector<2x32xf32>
    %325 = arith.mulf %320, %324 : vector<2x32xf32>
    %326 = vector.extract_strided_slice %238 {offsets = [6, 0], sizes = [2, 128], strides = [1, 1]} : vector<16x128xf32> to vector<2x128xf32>
    %cst_62 = arith.constant dense<0.000000e+00> : vector<2x128xf32>
    %327 = tpu.matmul %325, %239, %cst_62 {dimension_numbers = #tpu.dot_dimension_numbers<[1], [0], [0], [1], [0, 0, 1, 1], [], []>} : vector<2x32xf32>, vector<32x128xf32>, vector<2x128xf32> -> vector<2x128xf32>
    %328 = arith.addf %326, %327 : vector<2x128xf32>
    %329 = vector.extract_strided_slice %328 {offsets = [0, 0], sizes = [2, 32], strides = [1, 1]} : vector<2x128xf32> to vector<2x32xf32>
    %330 = arith.negf %329 : vector<2x32xf32>
    %331 = math.exp %330 : vector<2x32xf32>
    %cst_63 = arith.constant 1.000000e+00 : f32
    %332 = vector.broadcast %cst_63 : f32 to vector<2x32xf32>
    %333 = arith.addf %332, %331 : vector<2x32xf32>
    %334 = arith.divf %332, %333 : vector<2x32xf32>
    %335 = vector.extract_strided_slice %328 {offsets = [0, 32], sizes = [2, 32], strides = [1, 1]} : vector<2x128xf32> to vector<2x32xf32>
    %336 = arith.negf %335 : vector<2x32xf32>
    %337 = math.exp %336 : vector<2x32xf32>
    %cst_64 = arith.constant 1.000000e+00 : f32
    %338 = vector.broadcast %cst_64 : f32 to vector<2x32xf32>
    %339 = arith.addf %338, %337 : vector<2x32xf32>
    %340 = arith.divf %338, %339 : vector<2x32xf32>
    %341 = vector.extract_strided_slice %328 {offsets = [0, 64], sizes = [2, 32], strides = [1, 1]} : vector<2x128xf32> to vector<2x32xf32>
    %342 = math.tanh %341 : vector<2x32xf32>
    %343 = vector.extract_strided_slice %328 {offsets = [0, 96], sizes = [2, 32], strides = [1, 1]} : vector<2x128xf32> to vector<2x32xf32>
    %344 = arith.negf %343 : vector<2x32xf32>
    %345 = math.exp %344 : vector<2x32xf32>
    %cst_65 = arith.constant 1.000000e+00 : f32
    %346 = vector.broadcast %cst_65 : f32 to vector<2x32xf32>
    %347 = arith.addf %346, %345 : vector<2x32xf32>
    %348 = arith.divf %346, %347 : vector<2x32xf32>
    %349 = arith.mulf %340, %323 : vector<2x32xf32>
    %350 = arith.mulf %334, %342 : vector<2x32xf32>
    %351 = arith.addf %349, %350 : vector<2x32xf32>
    %352 = math.tanh %351 : vector<2x32xf32>
    %353 = arith.mulf %348, %352 : vector<2x32xf32>
    %354 = vector.extract_strided_slice %238 {offsets = [8, 0], sizes = [2, 128], strides = [1, 1]} : vector<16x128xf32> to vector<2x128xf32>
    %cst_66 = arith.constant dense<0.000000e+00> : vector<2x128xf32>
    %355 = tpu.matmul %353, %239, %cst_66 {dimension_numbers = #tpu.dot_dimension_numbers<[1], [0], [0], [1], [0, 0, 1, 1], [], []>} : vector<2x32xf32>, vector<32x128xf32>, vector<2x128xf32> -> vector<2x128xf32>
    %356 = arith.addf %354, %355 : vector<2x128xf32>
    %357 = vector.extract_strided_slice %356 {offsets = [0, 0], sizes = [2, 32], strides = [1, 1]} : vector<2x128xf32> to vector<2x32xf32>
    %358 = arith.negf %357 : vector<2x32xf32>
    %359 = math.exp %358 : vector<2x32xf32>
    %cst_67 = arith.constant 1.000000e+00 : f32
    %360 = vector.broadcast %cst_67 : f32 to vector<2x32xf32>
    %361 = arith.addf %360, %359 : vector<2x32xf32>
    %362 = arith.divf %360, %361 : vector<2x32xf32>
    %363 = vector.extract_strided_slice %356 {offsets = [0, 32], sizes = [2, 32], strides = [1, 1]} : vector<2x128xf32> to vector<2x32xf32>
    %364 = arith.negf %363 : vector<2x32xf32>
    %365 = math.exp %364 : vector<2x32xf32>
    %cst_68 = arith.constant 1.000000e+00 : f32
    %366 = vector.broadcast %cst_68 : f32 to vector<2x32xf32>
    %367 = arith.addf %366, %365 : vector<2x32xf32>
    %368 = arith.divf %366, %367 : vector<2x32xf32>
    %369 = vector.extract_strided_slice %356 {offsets = [0, 64], sizes = [2, 32], strides = [1, 1]} : vector<2x128xf32> to vector<2x32xf32>
    %370 = math.tanh %369 : vector<2x32xf32>
    %371 = vector.extract_strided_slice %356 {offsets = [0, 96], sizes = [2, 32], strides = [1, 1]} : vector<2x128xf32> to vector<2x32xf32>
    %372 = arith.negf %371 : vector<2x32xf32>
    %373 = math.exp %372 : vector<2x32xf32>
    %cst_69 = arith.constant 1.000000e+00 : f32
    %374 = vector.broadcast %cst_69 : f32 to vector<2x32xf32>
    %375 = arith.addf %374, %373 : vector<2x32xf32>
    %376 = arith.divf %374, %375 : vector<2x32xf32>
    %377 = arith.mulf %368, %351 : vector<2x32xf32>
    %378 = arith.mulf %362, %370 : vector<2x32xf32>
    %379 = arith.addf %377, %378 : vector<2x32xf32>
    %380 = math.tanh %379 : vector<2x32xf32>
    %381 = arith.mulf %376, %380 : vector<2x32xf32>
    %382 = vector.extract_strided_slice %238 {offsets = [10, 0], sizes = [2, 128], strides = [1, 1]} : vector<16x128xf32> to vector<2x128xf32>
    %cst_70 = arith.constant dense<0.000000e+00> : vector<2x128xf32>
    %383 = tpu.matmul %381, %239, %cst_70 {dimension_numbers = #tpu.dot_dimension_numbers<[1], [0], [0], [1], [0, 0, 1, 1], [], []>} : vector<2x32xf32>, vector<32x128xf32>, vector<2x128xf32> -> vector<2x128xf32>
    %384 = arith.addf %382, %383 : vector<2x128xf32>
    %385 = vector.extract_strided_slice %384 {offsets = [0, 0], sizes = [2, 32], strides = [1, 1]} : vector<2x128xf32> to vector<2x32xf32>
    %386 = arith.negf %385 : vector<2x32xf32>
    %387 = math.exp %386 : vector<2x32xf32>
    %cst_71 = arith.constant 1.000000e+00 : f32
    %388 = vector.broadcast %cst_71 : f32 to vector<2x32xf32>
    %389 = arith.addf %388, %387 : vector<2x32xf32>
    %390 = arith.divf %388, %389 : vector<2x32xf32>
    %391 = vector.extract_strided_slice %384 {offsets = [0, 32], sizes = [2, 32], strides = [1, 1]} : vector<2x128xf32> to vector<2x32xf32>
    %392 = arith.negf %391 : vector<2x32xf32>
    %393 = math.exp %392 : vector<2x32xf32>
    %cst_72 = arith.constant 1.000000e+00 : f32
    %394 = vector.broadcast %cst_72 : f32 to vector<2x32xf32>
    %395 = arith.addf %394, %393 : vector<2x32xf32>
    %396 = arith.divf %394, %395 : vector<2x32xf32>
    %397 = vector.extract_strided_slice %384 {offsets = [0, 64], sizes = [2, 32], strides = [1, 1]} : vector<2x128xf32> to vector<2x32xf32>
    %398 = math.tanh %397 : vector<2x32xf32>
    %399 = vector.extract_strided_slice %384 {offsets = [0, 96], sizes = [2, 32], strides = [1, 1]} : vector<2x128xf32> to vector<2x32xf32>
    %400 = arith.negf %399 : vector<2x32xf32>
    %401 = math.exp %400 : vector<2x32xf32>
    %cst_73 = arith.constant 1.000000e+00 : f32
    %402 = vector.broadcast %cst_73 : f32 to vector<2x32xf32>
    %403 = arith.addf %402, %401 : vector<2x32xf32>
    %404 = arith.divf %402, %403 : vector<2x32xf32>
    %405 = arith.mulf %396, %379 : vector<2x32xf32>
    %406 = arith.mulf %390, %398 : vector<2x32xf32>
    %407 = arith.addf %405, %406 : vector<2x32xf32>
    %408 = math.tanh %407 : vector<2x32xf32>
    %409 = arith.mulf %404, %408 : vector<2x32xf32>
    %410 = vector.extract_strided_slice %238 {offsets = [12, 0], sizes = [2, 128], strides = [1, 1]} : vector<16x128xf32> to vector<2x128xf32>
    %cst_74 = arith.constant dense<0.000000e+00> : vector<2x128xf32>
    %411 = tpu.matmul %409, %239, %cst_74 {dimension_numbers = #tpu.dot_dimension_numbers<[1], [0], [0], [1], [0, 0, 1, 1], [], []>} : vector<2x32xf32>, vector<32x128xf32>, vector<2x128xf32> -> vector<2x128xf32>
    %412 = arith.addf %410, %411 : vector<2x128xf32>
    %413 = vector.extract_strided_slice %412 {offsets = [0, 0], sizes = [2, 32], strides = [1, 1]} : vector<2x128xf32> to vector<2x32xf32>
    %414 = arith.negf %413 : vector<2x32xf32>
    %415 = math.exp %414 : vector<2x32xf32>
    %cst_75 = arith.constant 1.000000e+00 : f32
    %416 = vector.broadcast %cst_75 : f32 to vector<2x32xf32>
    %417 = arith.addf %416, %415 : vector<2x32xf32>
    %418 = arith.divf %416, %417 : vector<2x32xf32>
    %419 = vector.extract_strided_slice %412 {offsets = [0, 32], sizes = [2, 32], strides = [1, 1]} : vector<2x128xf32> to vector<2x32xf32>
    %420 = arith.negf %419 : vector<2x32xf32>
    %421 = math.exp %420 : vector<2x32xf32>
    %cst_76 = arith.constant 1.000000e+00 : f32
    %422 = vector.broadcast %cst_76 : f32 to vector<2x32xf32>
    %423 = arith.addf %422, %421 : vector<2x32xf32>
    %424 = arith.divf %422, %423 : vector<2x32xf32>
    %425 = vector.extract_strided_slice %412 {offsets = [0, 64], sizes = [2, 32], strides = [1, 1]} : vector<2x128xf32> to vector<2x32xf32>
    %426 = math.tanh %425 : vector<2x32xf32>
    %427 = vector.extract_strided_slice %412 {offsets = [0, 96], sizes = [2, 32], strides = [1, 1]} : vector<2x128xf32> to vector<2x32xf32>
    %428 = arith.negf %427 : vector<2x32xf32>
    %429 = math.exp %428 : vector<2x32xf32>
    %cst_77 = arith.constant 1.000000e+00 : f32
    %430 = vector.broadcast %cst_77 : f32 to vector<2x32xf32>
    %431 = arith.addf %430, %429 : vector<2x32xf32>
    %432 = arith.divf %430, %431 : vector<2x32xf32>
    %433 = arith.mulf %424, %407 : vector<2x32xf32>
    %434 = arith.mulf %418, %426 : vector<2x32xf32>
    %435 = arith.addf %433, %434 : vector<2x32xf32>
    %436 = math.tanh %435 : vector<2x32xf32>
    %437 = arith.mulf %432, %436 : vector<2x32xf32>
    %438 = vector.extract_strided_slice %238 {offsets = [14, 0], sizes = [2, 128], strides = [1, 1]} : vector<16x128xf32> to vector<2x128xf32>
    %cst_78 = arith.constant dense<0.000000e+00> : vector<2x128xf32>
    %439 = tpu.matmul %437, %239, %cst_78 {dimension_numbers = #tpu.dot_dimension_numbers<[1], [0], [0], [1], [0, 0, 1, 1], [], []>} : vector<2x32xf32>, vector<32x128xf32>, vector<2x128xf32> -> vector<2x128xf32>
    %440 = arith.addf %438, %439 : vector<2x128xf32>
    %441 = vector.extract_strided_slice %440 {offsets = [0, 0], sizes = [2, 32], strides = [1, 1]} : vector<2x128xf32> to vector<2x32xf32>
    %442 = arith.negf %441 : vector<2x32xf32>
    %443 = math.exp %442 : vector<2x32xf32>
    %cst_79 = arith.constant 1.000000e+00 : f32
    %444 = vector.broadcast %cst_79 : f32 to vector<2x32xf32>
    %445 = arith.addf %444, %443 : vector<2x32xf32>
    %446 = arith.divf %444, %445 : vector<2x32xf32>
    %447 = vector.extract_strided_slice %440 {offsets = [0, 32], sizes = [2, 32], strides = [1, 1]} : vector<2x128xf32> to vector<2x32xf32>
    %448 = arith.negf %447 : vector<2x32xf32>
    %449 = math.exp %448 : vector<2x32xf32>
    %cst_80 = arith.constant 1.000000e+00 : f32
    %450 = vector.broadcast %cst_80 : f32 to vector<2x32xf32>
    %451 = arith.addf %450, %449 : vector<2x32xf32>
    %452 = arith.divf %450, %451 : vector<2x32xf32>
    %453 = vector.extract_strided_slice %440 {offsets = [0, 64], sizes = [2, 32], strides = [1, 1]} : vector<2x128xf32> to vector<2x32xf32>
    %454 = math.tanh %453 : vector<2x32xf32>
    %455 = vector.extract_strided_slice %440 {offsets = [0, 96], sizes = [2, 32], strides = [1, 1]} : vector<2x128xf32> to vector<2x32xf32>
    %456 = arith.negf %455 : vector<2x32xf32>
    %457 = math.exp %456 : vector<2x32xf32>
    %cst_81 = arith.constant 1.000000e+00 : f32
    %458 = vector.broadcast %cst_81 : f32 to vector<2x32xf32>
    %459 = arith.addf %458, %457 : vector<2x32xf32>
    %460 = arith.divf %458, %459 : vector<2x32xf32>
    %461 = arith.mulf %452, %435 : vector<2x32xf32>
    %462 = arith.mulf %446, %454 : vector<2x32xf32>
    %463 = arith.addf %461, %462 : vector<2x32xf32>
    %464 = math.tanh %463 : vector<2x32xf32>
    %465 = arith.mulf %460, %464 : vector<2x32xf32>
    %466 = tpu.concatenate %232, %465 in 0 : vector<2x32xf32>, vector<2x32xf32> -> vector<4x32xf32>
    %cst_82 = arith.constant 0.000000e+00 : f32
    %467 = vector.broadcast %cst_82 : f32 to vector<4x32xf32>
    %468 = arith.maximumf %466, %467 : vector<4x32xf32>
    %c0_83 = arith.constant 0 : index
    %c0_84 = arith.constant 0 : index
    %469 = vector.load %arg7[%c0_83, %c0_84] : memref<32x128xf32, #tpu.memory_space<vmem>>, vector<32x128xf32>
    %cst_85 = arith.constant dense<0.000000e+00> : vector<4x128xf32>
    %470 = tpu.matmul %468, %469, %cst_85 {dimension_numbers = #tpu.dot_dimension_numbers<[1], [0], [0], [1], [0, 0, 1, 1], [], []>} : vector<4x32xf32>, vector<32x128xf32>, vector<4x128xf32> -> vector<4x128xf32>
    %c0_86 = arith.constant 0 : index
    %c0_87 = arith.constant 0 : index
    %471 = vector.load %arg8[%c0_86, %c0_87] : memref<1x128xf32, #tpu.memory_space<vmem>>, vector<1x128xf32>
    %472 = vector.broadcast %471 : vector<1x128xf32> to vector<4x128xf32>
    %473 = arith.addf %470, %472 : vector<4x128xf32>
    %cst_88 = arith.constant 0.000000e+00 : f32
    %474 = vector.broadcast %cst_88 : f32 to vector<4x128xf32>
    %475 = arith.maximumf %473, %474 : vector<4x128xf32>
    %c0_89 = arith.constant 0 : index
    %c0_90 = arith.constant 0 : index
    %476 = vector.load %arg9[%c0_89, %c0_90] : memref<128x5xf32, #tpu.memory_space<vmem>>, vector<128x5xf32>
    %cst_91 = arith.constant dense<0.000000e+00> : vector<4x5xf32>
    %477 = tpu.matmul %475, %476, %cst_91 {dimension_numbers = #tpu.dot_dimension_numbers<[1], [0], [0], [1], [0, 0, 1, 1], [], []>} : vector<4x128xf32>, vector<128x5xf32>, vector<4x5xf32> -> vector<4x5xf32>
    %c0_92 = arith.constant 0 : index
    %c0_93 = arith.constant 0 : index
    %478 = vector.load %arg10[%c0_92, %c0_93] : memref<1x5xf32, #tpu.memory_space<vmem>>, vector<1x5xf32>
    %479 = vector.broadcast %478 : vector<1x5xf32> to vector<4x5xf32>
    %480 = arith.addf %477, %479 : vector<4x5xf32>
    %c0_94 = arith.constant 0 : index
    %c0_95 = arith.constant 0 : index
    %481 = vector.load %arg11[%c0_94, %c0_95] : memref<4x5xf32, #tpu.memory_space<vmem>>, vector<4x5xf32>
    tpu.vector_store %arg11[%c0_94, %c0_95], %480 {strides = array<i32>} : memref<4x5xf32, #tpu.memory_space<vmem>>, vector<4x5xf32>,
    return
  }
}

</mosaic_0001>

<bundles_post_ra>
// kernel: tpu_custom_call.1
= control target key start
LH: loop header
LB: loop body
LE: loop exit
PB: predicated region body
PF: predicated region fallthrough
CT: control target
= control target key end

     0   :  { %vm56_vm0 = vcmask 1043456   ;;  %vm49_vm1 = vcmask 31744   ;;  %v2814_v8 = vmov 0.0|0.0   ;;  %s3259_s0 = inlined_call_operand.vmem [shape: f32[16,4], index: 0, kind: input, shape index: {}]   ;;  %s3260_s1 = inlined_call_operand.vmem [shape: f32[4,128], index: 1, kind: input, shape index: {}]   ;;  %s3261_s2 = inlined_call_operand.vmem [shape: f32[32,128], index: 2, kind: input, shape index: {}]   ;;  %s3262_s3 = inlined_call_operand.vmem [shape: f32[1,128], index: 3, kind: input, shape index: {}]   ;;  %s3263_s4 = inlined_call_operand.vmem [shape: f32[32,128], index: 4, kind: input, shape index: {}]   ;;  %s3264_s5 = inlined_call_operand.vmem [shape: f32[32,128], index: 5, kind: input, shape index: {}]   ;;  %s3265_s6 = inlined_call_operand.vmem [shape: f32[1,128], index: 6, kind: input, shape index: {}]   ;;  %s3266_s7 = inlined_call_operand.vmem [shape: f32[32,128], index: 7, kind: input, shape index: {}]   ;;  %s3267_s8 = inlined_call_operand.vmem [shape: f32[1,128], index: 8, kind: input, shape index: {}]   ;;  %s3268_s9 = inlined_call_operand.vmem [shape: f32[128,5], index: 9, kind: input, shape index: {}]   ;;  %s3269_s10 = inlined_call_operand.vmem [shape: f32[1,5], index: 10, kind: input, shape index: {}]   ;;  %s3270_s11 = inlined_call_operand.hbm [shape: f32[4,5], index: 11, kind: output, shape index: {}]  }
   0x1   :  { %v41_v0 = vld [vmem:[%s3260_s1] sm:$0xf]  ;;  %v40_v2 = vld [vmem:[%s3259_s0 + $0x8] sm:$0xff]  ;;  %v137_v5 = vld [vmem:[%s3261_s2 + $0x10] sm:$0xff]  ;;  %2546 = vmatprep.subr.bf16.mxu1 %v2814_v8 }
   0x2   :  { %v39_v1 = vld [vmem:[%s3259_s0] sm:$0xff]  ;;  %2284 = vmatprep.subr.msk.mxu0 %vm56_vm0, %v41_v0  ;;  %v136_v4 = vld [vmem:[%s3261_s2 + $0x8] sm:$0xff]  ;;  %v138_v7 = vld [vmem:[%s3261_s2 + $0x18] sm:$0xff] }
   0x3   :  { %2286 = vmatprep.mubr.msk.f32.mxu0 %vm49_vm1, %v39_v1  ;;  %v135_v3 = vld [vmem:[%s3261_s2] sm:$0xff]  ;;  %2285 = vmatpush3.msk.msra.mxu0 %vm56_vm0, %v41_v0 }
   0x4   :  { %v2900_v6 = vpack.c.bf16 %v136_v4, %v135_v3 }
   0x5   :  { %16 = vsyncpa [#allocation3], 0  ;;  %2287 = vmatmul.mubr.msk.f32.vlgmr.msra.gmra.mrb[0].mxu0 %vm49_vm1, %v40_v2  ;;  %2522 = vmatprep.subr.bf16.mxu0 %v2814_v8  ;;  %v2908_v9 = vpack.c.bf16 %v138_v7, %v137_v5  ;;  %vm2815_vm2 = vmmov 0   ;;  %v2816_v10 = vmov 0.0   ;;  %v2133_v11 = vld [vmem:[%s3262_s3] ss:$0 sm:$0xff] }
   0x6   :  { %2524 = vmatpush3.bf16.msra.mxu0 %v2900_v6  ;;  %2297 = vmatprep.mubr.msk.f32.mxu0 %vm2815_vm2, %v2816_v10  ;;  %s2817_s30 = smov 64   ;;  %s2818_s3 = smov 32   ;;  %vm139_vm3 = vcmask 261120   ;;  %vm982_vm4 = vcmask 1041408   ;;  %vm985_vm5 = vcmask 1045504   ;;  %vm2117_vm6 = vcmask 35840  }
   0x7   :  { %2525 = vmatprep.subr.bf16.mxu0 %v2814_v8  ;;  %2548 = vmatpush3.bf16.msra.mxu1 %v2900_v6  ;;  %s2819_s21 = smov [#allocation2]  }
   0x8   :  { %2549 = vmatprep.subr.bf16.mxu1 %v2814_v8  ;;  %2341 = vmatprep.mubr.msk.f32.mxu1 %vm2815_vm2, %v2816_v10  ;;  %s2125_s22 = sshll.u32 %s2819_s21, 4  ;;  %s2126_s22 = int_to_ptr.vmem [resolvable:$true] %s2125_s22 }
   0x9   :  { %p2795_p1 = scmp.lt.s32.totalorder %s2126_s22, %s2126_s22 }
   0xa   :  { %2527 = vmatpush3.bf16.msra.mxu0 %v2908_v9 }
   0xb   :  { %2528 = vmatprep.subr.bf16.mxu0 %v2814_v8  ;;  %2551 = vmatpush3.bf16.msra.mxu1 %v2908_v9 }
   0xc   :  { %2558 = vmatprep.subr.bf16.mxu1 %v2814_v8 }
   0xd   :  { %2298 = vmatmul.mubr.f32.vlgmr.msra.gmra.mrb[2].mxu0 %v2816_v10 }
   0xe   :  { %2530 = vmatpush3.bf16.msra.mxu0 %v2900_v6  ;;  %2308 = vmatprep.mubr.msk.f32.mxu0 %vm2815_vm2, %v2816_v10 }
   0xf   :  { %2531 = vmatprep.subr.bf16.mxu0 %v2814_v8 }
  0x12   :  { %2533 = vmatpush3.bf16.msra.mxu0 %v2908_v9 }
  0x13   :  { %2534 = vmatprep.subr.bf16.mxu0 %v2814_v8 }
  0xd8   :  { %v2288_v12 = vpop.f32.mrb[0].mxu0 }
  0xd9   :  { %v2931_v13 = vadd.f32 %v2288_v12, %v2133_v11  ;;  %v126_v14 = vpop.f32.mrb[1].mxu0 }
  0xda   :  { %v2933_v15 = vadd.f32 %v2133_v11, %v126_v14 }
  0xe0   :  { %v209_v16 = vpop.f32.mrb[2].mxu0 }
  0xe1   :  { %v213_v17 = vadd.f32 %v209_v16, %v2933_v15  ;;  %v2299_v18 = vpop.f32.mrb[3].mxu0 }
  0xe3   :  { %2662 = vtanh.f32 %v213_v17  ;;  %v2137_v20 = vmul.f32 -1.442695, %v213_v17 }
  0xe5   :  { %2664 = vpow2.f32 %v2137_v20 }
  0xed   :  { %v2663_v19 = vpop.eup %2662 }
  0xee   :  { %223 = vrot.lane.b32.xlu0 %v2663_v19, %s2817_s30 }
  0xef   :  { %v2665_v21 = vpop.eup %2664 }
  0xf0   :  { %v217_v22 = vadd.f32 1.0, %v2665_v21 }
  0xf2   :  { %2666 = vrcp.f32 %v217_v22 }
  0xfc   :  { %v2667_v23 = vpop.eup %2666 }
  0xfd   :  { %v221_v26 = vmul.f32 0.0, %v2667_v23 }
 0x160   :  { %v224_v24 = vpop.permute.xlu0 %223 }
 0x161   :  { %v226_v25 = vmul.f32 %v2667_v23, %v224_v24 }
 0x163   :  { %228 = vrot.lane.b32.xlu0 %v226_v25, %s2818_s3 }
 0x1d5   :  { %v229_v27 = vpop.permute.xlu0 %228 }
 0x1d6   :  { %v231_v28 = vadd.f32 %v229_v27, %v221_v26 }
 0x1d8   :  { %2668 = vtanh.f32 %v231_v28  ;;  %v325_v44 = vrot.slane %v231_v28, 6 }
 0x1e2   :  { %v2669_v29 = vpop.eup %2668 }
 0x1e3   :  { %234 = vrot.lane.b32.xlu1 %v2669_v29, %s2817_s30 }
 0x255   :  { %v235_v30 = vpop.permute.xlu1 %234 }
 0x256   :  { %v2939_v31 = vmul.f32 %v2667_v23, %v235_v30 }
 0x258   :  { %239 = vrot.lane.b32.xlu1 %v2939_v31, %s2818_s3 }
 0x2ca   :  { %v240_v32 = vpop.permute.xlu1 %239 }
 0x2cb   :  { %2309 = vmatmul.mubr.msk.f32.vlgmr.msra.gmra.mrb[4].mxu0 %vm139_vm3, %v240_v32 }
 0x2cc   :  { %2536 = vmatpush3.bf16.msra.mxu0 %v2900_v6  ;;  %2319 = vmatprep.mubr.msk.f32.mxu0 %vm2815_vm2, %v2816_v10 }
 0x2cd   :  { %2537 = vmatprep.subr.bf16.mxu0 %v2814_v8 }
 0x2d0   :  { %2539 = vmatpush3.bf16.msra.mxu0 %v2908_v9 }
 0x2d1   :  { %2540 = vmatprep.subr.bf16.mxu0 %v2814_v8 }
 0x39e   :  { %v309_v33 = vpop.f32.mrb[4].mxu0 }
 0x39f   :  { %v314_v34 = vrot.slane %v309_v33, 6  ;;  %v2310_v35 = vpop.f32.mrb[5].mxu0 }
 0x3a1   :  { %v316_v36 = vadd.f32 %v314_v34, %v2933_v15 }
 0x3a3   :  { %2670 = vtanh.f32 %v316_v36  ;;  %v2139_v38 = vmul.f32 -1.442695, %v316_v36 }
 0x3a5   :  { %2672 = vpow2.f32 %v2139_v38 }
 0x3ad   :  { %v2671_v37 = vpop.eup %2670 }
 0x3ae   :  { %329 = vrot.lane.b32.xlu0 %v2671_v37, %s2817_s30 }
 0x3af   :  { %v2673_v39 = vpop.eup %2672 }
 0x3b0   :  { %v320_v40 = vadd.f32 1.0, %v2673_v39 }
 0x3b2   :  { %2674 = vrcp.f32 %v320_v40 }
 0x3bc   :  { %v2675_v41 = vpop.eup %2674 }
 0x3bd   :  { %v327_v45 = vmul.f32 %v2675_v41, %v325_v44 }
 0x420   :  { %v330_v42 = vpop.permute.xlu0 %329 }
 0x421   :  { %v332_v43 = vmul.f32 %v2675_v41, %v330_v42 }
 0x423   :  { %334 = vrot.lane.b32.xlu1 %v332_v43, %s2818_s3 }
 0x495   :  { %v335_v46 = vpop.permute.xlu1 %334 }
 0x496   :  { %v337_v47 = vadd.f32 %v335_v46, %v327_v45 }
 0x498   :  { %2676 = vtanh.f32 %v337_v47  ;;  %v432_v0 = vrot.slane %v337_v47, 6 }
 0x4a2   :  { %v2677_v48 = vpop.eup %2676 }
 0x4a3   :  { %340 = vrot.lane.b32.xlu0 %v2677_v48, %s2817_s30 }
 0x515   :  { %v341_v49 = vpop.permute.xlu0 %340 }
 0x516   :  { %v343_v50 = vmul.f32 %v2675_v41, %v341_v49 }
 0x518   :  { %v345_v51 = vrot.slane %v343_v50, 2  ;;  %v983_v11 = vsel %vm982_vm4, %v2939_v31, %v343_v50 }
 0x51a   :  { %346 = vrot.lane.b32.xlu1 %v345_v51, %s2818_s3 }
 0x58c   :  { %v347_v52 = vpop.permute.xlu1 %346 }
 0x58d   :  { %2320 = vmatmul.mubr.msk.f32.vlgmr.msra.gmra.mrb[6].mxu0 %vm139_vm3, %v347_v52 }
 0x58e   :  { %2542 = vmatpush3.bf16.msra.mxu0 %v2900_v6  ;;  %2330 = vmatprep.mubr.msk.f32.mxu0 %vm2815_vm2, %v2816_v10 }
 0x58f   :  { %2543 = vmatprep.subr.bf16.mxu0 %v2814_v8 }
 0x592   :  { %2545 = vmatpush3.bf16.msra.mxu0 %v2908_v9 }
 0x593   :  { %2552 = vmatprep.subr.bf16.mxu0 %v2814_v8 }
 0x660   :  { %v416_v53 = vpop.f32.mrb[6].mxu0 }
 0x661   :  { %v421_v54 = vrot.slane %v416_v53, 4  ;;  %v2321_v55 = vpop.f32.mrb[7].mxu0 }
 0x663   :  { %v423_v56 = vadd.f32 %v421_v54, %v2933_v15 }
 0x665   :  { %2678 = vtanh.f32 %v423_v56  ;;  %v2141_v58 = vmul.f32 -1.442695, %v423_v56 }
 0x667   :  { %2680 = vpow2.f32 %v2141_v58 }
 0x66f   :  { %v2679_v57 = vpop.eup %2678 }
 0x670   :  { %436 = vrot.lane.b32.xlu0 %v2679_v57, %s2817_s30 }
 0x671   :  { %v2681_v59 = vpop.eup %2680 }
 0x672   :  { %v427_v60 = vadd.f32 1.0, %v2681_v59 }
 0x674   :  { %2682 = vrcp.f32 %v427_v60 }
 0x67e   :  { %v2683_v61 = vpop.eup %2682 }
 0x67f   :  { %v434_v1 = vmul.f32 %v2683_v61, %v432_v0 }
 0x6e2   :  { %v437_v62 = vpop.permute.xlu0 %436 }
 0x6e3   :  { %v439_v63 = vmul.f32 %v2683_v61, %v437_v62 }
 0x6e5   :  { %441 = vrot.lane.b32.xlu1 %v439_v63, %s2818_s3 }
 0x757   :  { %v442_v2 = vpop.permute.xlu1 %441 }
 0x758   :  { %v444_v3 = vadd.f32 %v442_v2, %v434_v1 }
 0x75a   :  { %2684 = vtanh.f32 %v444_v3  ;;  %v539_v28 = vrot.slane %v444_v3, 6 }
 0x764   :  { %v2685_v4 = vpop.eup %2684 }
 0x765   :  { %447 = vrot.lane.b32.xlu0 %v2685_v4, %s2817_s30 }
 0x7d7   :  { %v448_v5 = vpop.permute.xlu0 %447 }
 0x7d8   :  { %v450_v7 = vmul.f32 %v2683_v61, %v448_v5 }
 0x7da   :  { %v452_v12 = vrot.slane %v450_v7, 4  ;;  %v984_v14 = vsel %vm56_vm0, %v983_v11, %v450_v7 }
 0x7dc   :  { %453 = vrot.lane.b32.xlu1 %v452_v12, %s2818_s3 }
 0x84e   :  { %v454_v16 = vpop.permute.xlu1 %453 }
 0x84f   :  { %2331 = vmatmul.mubr.msk.f32.vlgmr.msra.gmra.mrb[8].mxu0 %vm139_vm3, %v454_v16 }
 0x850   :  { %2554 = vmatpush3.bf16.msra.mxu0 %v2900_v6  ;;  %2352 = vmatprep.mubr.msk.f32.mxu0 %vm2815_vm2, %v2816_v10 }
 0x851   :  { %2555 = vmatprep.subr.bf16.mxu0 %v2814_v8 }
 0x854   :  { %2557 = vmatpush3.bf16.msra.mxu0 %v2908_v9 }
 0x855   :  { %2564 = vmatprep.subr.bf16.mxu0 %v2814_v8 }
 0x922   :  { %v523_v17 = vpop.f32.mrb[8].mxu0 }
 0x923   :  { %v528_v18 = vrot.slane %v523_v17, 2  ;;  %v2332_v19 = vpop.f32.mrb[9].mxu0 }
 0x925   :  { %v530_v20 = vadd.f32 %v528_v18, %v2933_v15 }
 0x927   :  { %2686 = vtanh.f32 %v530_v20  ;;  %v2143_v22 = vmul.f32 -1.442695, %v530_v20 }
 0x929   :  { %2688 = vpow2.f32 %v2143_v22 }
 0x931   :  { %v2687_v21 = vpop.eup %2686 }
 0x932   :  { %543 = vrot.lane.b32.xlu0 %v2687_v21, %s2817_s30 }
 0x933   :  { %v2689_v23 = vpop.eup %2688 }
 0x934   :  { %v534_v24 = vadd.f32 1.0, %v2689_v23 }
 0x936   :  { %2690 = vrcp.f32 %v534_v24 }
 0x940   :  { %v2691_v25 = vpop.eup %2690 }
 0x941   :  { %v541_v29 = vmul.f32 %v2691_v25, %v539_v28 }
 0x9a4   :  { %v544_v26 = vpop.permute.xlu0 %543 }
 0x9a5   :  { %v546_v27 = vmul.f32 %v2691_v25, %v544_v26 }
 0x9a7   :  { %548 = vrot.lane.b32.xlu1 %v546_v27, %s2818_s3 }
 0xa19   :  { %v549_v30 = vpop.permute.xlu1 %548 }
 0xa1a   :  { %v551_v31 = vadd.f32 %v549_v30, %v541_v29 }
 0xa1c   :  { %2692 = vtanh.f32 %v551_v31  ;;  %v643_v47 = vrot.slane %v551_v31, 6 }
 0xa26   :  { %v2693_v15 = vpop.eup %2692 }
 0xa27   :  { %554 = vrot.lane.b32.xlu0 %v2693_v15, %s2817_s30 }
 0xa99   :  { %v555_v32 = vpop.permute.xlu0 %554 }
 0xa9a   :  { %v557_v33 = vmul.f32 %v2691_v25, %v555_v32 }
 0xa9c   :  { %v559_v34 = vrot.slane %v557_v33, 6  ;;  %v2982_v35 = vsel %vm985_vm5, %v984_v14, %v557_v33 }
 0xa9e   :  { %560 = vrot.lane.b32.xlu1 %v559_v34, %s2818_s3 }
 0xb10   :  { %v561_v36 = vpop.permute.xlu1 %560 }
 0xb11   :  { %2342 = vmatmul.mubr.msk.f32.vlgmr.msra.gmra.mrb[0].mxu1 %vm139_vm3, %v561_v36 }
 0xb12   :  { %2560 = vmatpush3.bf16.msra.mxu1 %v2900_v6  ;;  %2363 = vmatprep.mubr.msk.f32.mxu1 %vm2815_vm2, %v2816_v10 }
 0xb13   :  { %2561 = vmatprep.subr.bf16.mxu1 %v2814_v8 }
 0xb16   :  { %2563 = vmatpush3.bf16.msra.mxu1 %v2908_v9 }
 0xbe4   :  { %v630_v37 = vpop.f32.mrb[0].mxu1 }
 0xbe5   :  { %v634_v38 = vadd.f32 %v630_v37, %v2931_v13  ;;  %v2343_v39 = vpop.f32.mrb[1].mxu1 }
 0xbe7   :  { %2694 = vtanh.f32 %v634_v38  ;;  %v2145_v41 = vmul.f32 -1.442695, %v634_v38 }
 0xbe9   :  { %2696 = vpow2.f32 %v2145_v41 }
 0xbf1   :  { %v2695_v40 = vpop.eup %2694 }
 0xbf2   :  { %647 = vrot.lane.b32.xlu0 %v2695_v40, %s2817_s30 }
 0xbf3   :  { %v2697_v42 = vpop.eup %2696 }
 0xbf4   :  { %v638_v43 = vadd.f32 1.0, %v2697_v42 }
 0xbf6   :  { %2698 = vrcp.f32 %v638_v43 }
 0xc00   :  { %v2699_v44 = vpop.eup %2698 }
 0xc01   :  { %v645_v48 = vmul.f32 %v2699_v44, %v643_v47 }
 0xc64   :  { %v648_v45 = vpop.permute.xlu0 %647 }
 0xc65   :  { %v650_v46 = vmul.f32 %v2699_v44, %v648_v45 }
 0xc67   :  { %652 = vrot.lane.b32.xlu1 %v650_v46, %s2818_s3 }
 0xcd9   :  { %v653_v49 = vpop.permute.xlu1 %652 }
 0xcda   :  { %v655_v50 = vadd.f32 %v653_v49, %v645_v48 }
 0xcdc   :  { %2700 = vtanh.f32 %v655_v50 }
 0xce6   :  { %v2701_v51 = vpop.eup %2700 }
 0xce7   :  { %658 = vrot.lane.b32.xlu0 %v2701_v51, %s2817_s30 }
 0xd59   :  { %v659_v52 = vpop.permute.xlu0 %658 }
 0xd5a   :  { %v2995_v53 = vmul.f32 %v2699_v44, %v659_v52  ;;  %v990_v52 = vld [vmem:[%s3263_s4] sm:$0xff] }
 0xd5c   :  { %663 = vrot.lane.b32.xlu1 %v2995_v53, %s2818_s3 }
 0xdce   :  { %v664_v54 = vpop.permute.xlu1 %663 }
 0xdcf   :  { %2353 = vmatmul.mubr.msk.f32.vlgmr.msra.gmra.mrb[10].mxu0 %vm139_vm3, %v664_v54  ;;  %v1086_v54 = vld [vmem:[%s3264_s5] sm:$0xff] }
 0xdd0   :  { %2566 = vmatpush3.bf16.msra.mxu0 %v2900_v6  ;;  %2374 = vmatprep.mubr.msk.f32.mxu0 %vm2815_vm2, %v2816_v10 }
 0xdd1   :  { %2567 = vmatprep.subr.bf16.mxu0 %v2814_v8 }
 0xdd4   :  { %2569 = vmatpush3.bf16.msra.mxu0 %v2908_v9  ;;  %v749_v9 = vrot.slane %v655_v50, 6 }
 0xdd5   :  { %2578 = vmatprep.subr.bf16.mxu0 %v2814_v8 }
 0xea2   :  { %v733_v55 = vpop.f32.mrb[10].mxu0 }
 0xea3   :  { %v738_v56 = vrot.slane %v733_v55, 6  ;;  %v2354_v57 = vpop.f32.mrb[11].mxu0  ;;  %v1087_v55 = vld [vmem:[%s3264_s5 + $0x8] sm:$0xff] }
 0xea4   :  { %v993_v57 = vld [vmem:[%s3263_s4 + $0x18] sm:$0xff] }
 0xea5   :  { %v740_v58 = vadd.f32 %v738_v56, %v2931_v13  ;;  %v992_v56 = vld [vmem:[%s3263_s4 + $0x10] sm:$0xff] }
 0xea7   :  { %2702 = vtanh.f32 %v740_v58  ;;  %v2147_v60 = vmul.f32 -1.442695, %v740_v58  ;;  %v3047_v58 = vpack.c.bf16 %v1087_v55, %v1086_v54 }
 0xea9   :  { %2704 = vpow2.f32 %v2147_v60  ;;  %v1088_v60 = vld [vmem:[%s3264_s5 + $0x10] sm:$0xff] }
 0xeb1   :  { %v2703_v59 = vpop.eup %2702 }
 0xeb2   :  { %753 = vrot.lane.b32.xlu0 %v2703_v59, %s2817_s30  ;;  %v2574_v59 = vpack.c.bf16 %v993_v57, %v992_v56 }
 0xeb3   :  { %v2705_v6 = vpop.eup %2704 }
 0xeb4   :  { %v744_v61 = vadd.f32 1.0, %v2705_v6  ;;  %v1089_v6 = vld [vmem:[%s3264_s5 + $0x18] sm:$0xff] }
 0xeb6   :  { %2706 = vrcp.f32 %v744_v61  ;;  %v3056_v61 = vpack.c.bf16 %v1089_v6, %v1088_v60 }
 0xec0   :  { %v2707_v62 = vpop.eup %2706 }
 0xec1   :  { %v751_v1 = vmul.f32 %v2707_v62, %v749_v9 }
 0xf24   :  { %v754_v63 = vpop.permute.xlu0 %753 }
 0xf25   :  { %v756_v0 = vmul.f32 %v2707_v62, %v754_v63 }
 0xf27   :  { %758 = vrot.lane.b32.xlu1 %v756_v0, %s2818_s3 }
 0xf99   :  { %v759_v2 = vpop.permute.xlu1 %758 }
 0xf9a   :  { %v761_v3 = vadd.f32 %v759_v2, %v751_v1 }
 0xf9c   :  { %2708 = vtanh.f32 %v761_v3  ;;  %v856_v26 = vrot.slane %v761_v3, 6 }
 0xfa6   :  { %v2709_v4 = vpop.eup %2708 }
 0xfa7   :  { %764 = vrot.lane.b32.xlu0 %v2709_v4, %s2817_s30  ;;  %v2152_v4 = vld [vmem:[%s3265_s6] ss:$0 sm:$0xff] }
0x1019   :  { %v765_v5 = vpop.permute.xlu0 %764 }
0x101a   :  { %v767_v7 = vmul.f32 %v2707_v62, %v765_v5 }
0x101c   :  { %v769_v11 = vrot.slane %v767_v7, 2  ;;  %v987_v32 = vsel %vm982_vm4, %v2995_v53, %v767_v7  ;;  %v991_v53 = vld [vmem:[%s3263_s4 + $0x8] sm:$0xff] }
0x101e   :  { %770 = vrot.lane.b32.xlu1 %v769_v11, %s2818_s3 }
0x1090   :  { %v771_v12 = vpop.permute.xlu1 %770 }
0x1091   :  { %2364 = vmatmul.mubr.msk.f32.vlgmr.msra.gmra.mrb[2].mxu1 %vm139_vm3, %v771_v12 }
0x1164   :  { %v840_v14 = vpop.f32.mrb[2].mxu1 }
0x1165   :  { %v845_v16 = vrot.slane %v840_v14, 4  ;;  %v2365_v17 = vpop.f32.mrb[3].mxu1 }
0x1167   :  { %v847_v18 = vadd.f32 %v845_v16, %v2931_v13 }
0x1169   :  { %2710 = vtanh.f32 %v847_v18  ;;  %v2149_v20 = vmul.f32 -1.442695, %v847_v18 }
0x116b   :  { %2712 = vpow2.f32 %v2149_v20 }
0x1173   :  { %v2711_v19 = vpop.eup %2710 }
0x1174   :  { %860 = vrot.lane.b32.xlu0 %v2711_v19, %s2817_s30 }
0x1175   :  { %v2713_v21 = vpop.eup %2712 }
0x1176   :  { %v851_v22 = vadd.f32 1.0, %v2713_v21 }
0x1178   :  { %2714 = vrcp.f32 %v851_v22 }
0x1182   :  { %v2715_v23 = vpop.eup %2714 }
0x1183   :  { %v858_v27 = vmul.f32 %v2715_v23, %v856_v26 }
0x11e6   :  { %v861_v24 = vpop.permute.xlu0 %860 }
0x11e7   :  { %v863_v25 = vmul.f32 %v2715_v23, %v861_v24 }
0x11e9   :  { %865 = vrot.lane.b32.xlu1 %v863_v25, %s2818_s3 }
0x125b   :  { %v866_v28 = vpop.permute.xlu1 %865 }
0x125c   :  { %v868_v29 = vadd.f32 %v866_v28, %v858_v27 }
0x125e   :  { %2716 = vtanh.f32 %v868_v29  ;;  %v963_v48 = vrot.slane %v868_v29, 6 }
0x1268   :  { %v2717_v30 = vpop.eup %2716 }
0x1269   :  { %871 = vrot.lane.b32.xlu0 %v2717_v30, %s2817_s30 }
0x12db   :  { %v872_v31 = vpop.permute.xlu0 %871 }
0x12dc   :  { %v874_v15 = vmul.f32 %v2715_v23, %v872_v31 }
0x12de   :  { %v876_v33 = vrot.slane %v874_v15, 4  ;;  %v988_v34 = vsel %vm56_vm0, %v987_v32, %v874_v15 }
0x12e0   :  { %877 = vrot.lane.b32.xlu1 %v876_v33, %s2818_s3 }
0x1352   :  { %v878_v36 = vpop.permute.xlu1 %877 }
0x1353   :  { %2375 = vmatmul.mubr.msk.f32.vlgmr.msra.gmra.mrb[12].mxu0 %vm139_vm3, %v878_v36 }
0x1354   :  { %2396 = vmatprep.mubr.msk.f32.mxu0 %vm2815_vm2, %v2816_v10  ;;  %2580 = vmatpush3.bf16.msra.mxu0 %v3047_v58 }
0x1355   :  { %2581 = vmatprep.subr.bf16.mxu0 %v2814_v8 }
0x1358   :  { %2583 = vmatpush3.bf16.msra.mxu0 %v3056_v61 }
0x1359   :  { %2590 = vmatprep.subr.bf16.mxu0 %v2814_v8 }
0x135b   :  { %2397 = vmatmul.mubr.f32.vlgmr.msra.gmra.mrb[14].mxu0 %v2816_v10 }
0x135c   :  { %2592 = vmatpush3.bf16.msra.mxu0 %v3047_v58  ;;  %2418 = vmatprep.mubr.msk.f32.mxu0 %vm2815_vm2, %v2816_v10 }
0x135d   :  { %2593 = vmatprep.subr.bf16.mxu0 %v2814_v8 }
0x1360   :  { %2595 = vmatpush3.bf16.msra.mxu0 %v3056_v61 }
0x1361   :  { %2602 = vmatprep.subr.bf16.mxu0 %v2814_v8 }
0x1426   :  { %v947_v37 = vpop.f32.mrb[12].mxu0 }
0x1427   :  { %v952_v38 = vrot.slane %v947_v37, 2  ;;  %v2376_v39 = vpop.f32.mrb[13].mxu0 }
0x1429   :  { %v954_v40 = vadd.f32 %v952_v38, %v2931_v13 }
0x142b   :  { %2718 = vtanh.f32 %v954_v40  ;;  %v2151_v42 = vmul.f32 -1.442695, %v954_v40 }
0x142d   :  { %2720 = vpow2.f32 %v2151_v42 }
0x142e   :  { %v1156_v2 = vpop.f32.mrb[14].mxu0 }
0x142f   :  { %v2398_v3 = vpop.f32.mrb[15].mxu0 }
0x1435   :  { %v2719_v41 = vpop.eup %2718 }
0x1436   :  { %967 = vrot.lane.b32.xlu0 %v2719_v41, %s2817_s30 }
0x1437   :  { %v2721_v43 = vpop.eup %2720 }
0x1438   :  { %v958_v44 = vadd.f32 1.0, %v2721_v43 }
0x143a   :  { %2722 = vrcp.f32 %v958_v44 }
0x1444   :  { %v2723_v45 = vpop.eup %2722 }
0x1445   :  { %v965_v49 = vmul.f32 %v2723_v45, %v963_v48 }
0x14a8   :  { %v968_v46 = vpop.permute.xlu0 %967 }
0x14a9   :  { %v970_v47 = vmul.f32 %v2723_v45, %v968_v46 }
0x14ab   :  { %972 = vrot.lane.b32.xlu1 %v970_v47, %s2818_s3 }
0x14af   :  { %1003 = vrot.lane.b32.xlu1 %v2982_v35, %s2818_s3  ;;  %v2570_v35 = vpack.c.bf16 %v991_v53, %v990_v52 }
0x14b1   :  { %2571 = vmatprep.subr.bf16.mxu1 %v2570_v35 }
0x14b2   :  { %2573 = vmatpush3.bf16.msra.mxu1 %v2570_v35 }
0x14b3   :  { %2575 = vmatprep.subr.bf16.mxu1 %v2574_v59 }
0x14b6   :  { %2577 = vmatpush3.bf16.msra.mxu1 %v2574_v59 }
0x14b7   :  { %2584 = vmatprep.subr.bf16.mxu1 %v2814_v8 }
0x151d   :  { %v973_v13 = vpop.permute.xlu1 %972 }
0x151e   :  { %v975_v50 = vadd.f32 %v973_v13, %v965_v49 }
0x1520   :  { %2724 = vtanh.f32 %v975_v50 }
0x1521   :  { %v1004_v51 = vpop.permute.xlu1 %1003 }
0x1522   :  { %2385 = vmatprep.mubr.msk.f32.mxu1 %vm139_vm3, %v1004_v51 }
0x152a   :  { %v2725_v62 = vpop.eup %2724 }
0x152b   :  { %978 = vrot.lane.b32.xlu0 %v2725_v62, %s2817_s30 }
0x159d   :  { %v979_v63 = vpop.permute.xlu0 %978 }
0x159e   :  { %v3070_v0 = vmul.f32 %v2723_v45, %v979_v63 }
0x15a0   :  { %v989_v9 = vsel %vm985_vm5, %v988_v34, %v3070_v0 }
0x15a1   :  { %1005 = vrot.lane.b32.xlu0 %v989_v9, %s2818_s3 }
0x1613   :  { %v1006_v1 = vpop.permute.xlu0 %1005 }
0x1614   :  { %2386 = vmatmul.mubr.msk.f32.vlgmr.msra.gmra.mrb[4].mxu1 %vm139_vm3, %v1006_v1 }
0x1615   :  { %2586 = vmatpush3.bf16.msra.mxu1 %v3047_v58  ;;  %2407 = vmatprep.mubr.msk.f32.mxu1 %vm2815_vm2, %v2816_v10 }
0x1616   :  { %2587 = vmatprep.subr.bf16.mxu1 %v2814_v8 }
0x1619   :  { %2589 = vmatpush3.bf16.msra.mxu1 %v3056_v61 }
0x161a   :  { %2596 = vmatprep.subr.bf16.mxu1 %v2814_v8 }
0x16e7   :  { %v2387_v5 = vpop.f32.mrb[4].mxu1 }
0x16e8   :  { %v3085_v7 = vadd.f32 %v2387_v5, %v2152_v4  ;;  %v1077_v11 = vpop.f32.mrb[5].mxu1 }
0x16e9   :  { %v3087_v12 = vadd.f32 %v2152_v4, %v1077_v11 }
0x16eb   :  { %v1160_v14 = vadd.f32 %v1156_v2, %v3087_v12 }
0x16ed   :  { %2726 = vtanh.f32 %v1160_v14  ;;  %v2155_v17 = vmul.f32 -1.442695, %v1160_v14 }
0x16ef   :  { %2728 = vpow2.f32 %v2155_v17 }
0x16f7   :  { %v2727_v16 = vpop.eup %2726 }
0x16f8   :  { %1170 = vrot.lane.b32.xlu1 %v2727_v16, %s2817_s30 }
0x16f9   :  { %v2729_v18 = vpop.eup %2728 }
0x16fa   :  { %v1164_v19 = vadd.f32 1.0, %v2729_v18 }
0x16fc   :  { %2730 = vrcp.f32 %v1164_v19 }
0x1706   :  { %v2731_v20 = vpop.eup %2730 }
0x1707   :  { %v1168_v23 = vmul.f32 0.0, %v2731_v20 }
0x176a   :  { %v1171_v21 = vpop.permute.xlu1 %1170 }
0x176b   :  { %v1173_v22 = vmul.f32 %v2731_v20, %v1171_v21 }
0x176d   :  { %1175 = vrot.lane.b32.xlu0 %v1173_v22, %s2818_s3 }
0x17df   :  { %v1176_v24 = vpop.permute.xlu0 %1175 }
0x17e0   :  { %v1178_v25 = vadd.f32 %v1176_v24, %v1168_v23 }
0x17e2   :  { %2732 = vtanh.f32 %v1178_v25  ;;  %v1272_v41 = vrot.slane %v1178_v25, 6 }
0x17ec   :  { %v2733_v26 = vpop.eup %2732 }
0x17ed   :  { %1181 = vrot.lane.b32.xlu1 %v2733_v26, %s2817_s30 }
0x185f   :  { %v1182_v27 = vpop.permute.xlu1 %1181 }
0x1860   :  { %v1184_v28 = vmul.f32 %v2731_v20, %v1182_v27 }
0x1862   :  { %1186 = vrot.lane.b32.xlu0 %v1184_v28, %s2818_s3 }
0x18d4   :  { %v1187_v29 = vpop.permute.xlu0 %1186 }
0x18d5   :  { %2408 = vmatmul.mubr.msk.f32.vlgmr.msra.gmra.mrb[6].mxu1 %vm139_vm3, %v1187_v29 }
0x18d6   :  { %2598 = vmatpush3.bf16.msra.mxu1 %v3047_v58  ;;  %2429 = vmatprep.mubr.msk.f32.mxu1 %vm2815_vm2, %v2816_v10 }
0x18d7   :  { %2599 = vmatprep.subr.bf16.mxu1 %v2814_v8 }
0x18da   :  { %2601 = vmatpush3.bf16.msra.mxu1 %v3056_v61 }
0x18db   :  { %2608 = vmatprep.subr.bf16.mxu1 %v2814_v8 }
0x19a8   :  { %v1256_v30 = vpop.f32.mrb[6].mxu1 }
0x19a9   :  { %v1261_v31 = vrot.slane %v1256_v30, 6  ;;  %v2409_v15 = vpop.f32.mrb[7].mxu1 }
0x19ab   :  { %v1263_v32 = vadd.f32 %v1261_v31, %v3087_v12 }
0x19ad   :  { %2734 = vtanh.f32 %v1263_v32  ;;  %v2157_v34 = vmul.f32 -1.442695, %v1263_v32 }
0x19af   :  { %2736 = vpow2.f32 %v2157_v34 }
0x19b7   :  { %v2735_v33 = vpop.eup %2734 }
0x19b8   :  { %1276 = vrot.lane.b32.xlu1 %v2735_v33, %s2817_s30 }
0x19b9   :  { %v2737_v36 = vpop.eup %2736 }
0x19ba   :  { %v1267_v37 = vadd.f32 1.0, %v2737_v36 }
0x19bc   :  { %2738 = vrcp.f32 %v1267_v37 }
0x19c6   :  { %v2739_v38 = vpop.eup %2738 }
0x19c7   :  { %v1274_v42 = vmul.f32 %v2739_v38, %v1272_v41 }
0x1a2a   :  { %v1277_v39 = vpop.permute.xlu1 %1276 }
0x1a2b   :  { %v1279_v40 = vmul.f32 %v2739_v38, %v1277_v39 }
0x1a2d   :  { %1281 = vrot.lane.b32.xlu0 %v1279_v40, %s2818_s3 }
0x1a9f   :  { %v1282_v43 = vpop.permute.xlu0 %1281 }
0x1aa0   :  { %v1284_v44 = vadd.f32 %v1282_v43, %v1274_v42 }
0x1aa2   :  { %2740 = vtanh.f32 %v1284_v44  ;;  %v1379_v60 = vrot.slane %v1284_v44, 6 }
0x1aac   :  { %v2741_v45 = vpop.eup %2740 }
0x1aad   :  { %1287 = vrot.lane.b32.xlu1 %v2741_v45, %s2817_s30 }
0x1b1f   :  { %v1288_v46 = vpop.permute.xlu1 %1287 }
0x1b20   :  { %v1290_v47 = vmul.f32 %v2739_v38, %v1288_v46 }
0x1b22   :  { %v1292_v48 = vrot.slane %v1290_v47, 2 }
0x1b24   :  { %1293 = vrot.lane.b32.xlu0 %v1292_v48, %s2818_s3 }
0x1b96   :  { %v1294_v49 = vpop.permute.xlu0 %1293 }
0x1b97   :  { %2419 = vmatmul.mubr.msk.f32.vlgmr.msra.gmra.mrb[16].mxu0 %vm139_vm3, %v1294_v49 }
0x1b98   :  { %2604 = vmatpush3.bf16.msra.mxu0 %v3047_v58  ;;  %2440 = vmatprep.mubr.msk.f32.mxu0 %vm2815_vm2, %v2816_v10 }
0x1b99   :  { %2605 = vmatprep.subr.bf16.mxu0 %v2814_v8 }
0x1b9c   :  { %2607 = vmatpush3.bf16.msra.mxu0 %v3056_v61 }
0x1b9d   :  { %2614 = vmatprep.subr.bf16.mxu0 %v2814_v8 }
0x1c6a   :  { %v1363_v13 = vpop.f32.mrb[16].mxu0 }
0x1c6b   :  { %v1368_v50 = vrot.slane %v1363_v13, 4  ;;  %v2420_v51 = vpop.f32.mrb[17].mxu0 }
0x1c6d   :  { %v1370_v52 = vadd.f32 %v1368_v50, %v3087_v12 }
0x1c6f   :  { %2742 = vtanh.f32 %v1370_v52  ;;  %v2159_v54 = vmul.f32 -1.442695, %v1370_v52 }
0x1c71   :  { %2744 = vpow2.f32 %v2159_v54 }
0x1c79   :  { %v2743_v53 = vpop.eup %2742 }
0x1c7a   :  { %1383 = vrot.lane.b32.xlu1 %v2743_v53, %s2817_s30 }
0x1c7b   :  { %v2745_v35 = vpop.eup %2744 }
0x1c7c   :  { %v1374_v55 = vadd.f32 1.0, %v2745_v35 }
0x1c7e   :  { %2746 = vrcp.f32 %v1374_v55 }
0x1c88   :  { %v2747_v56 = vpop.eup %2746 }
0x1c89   :  { %v1381_v6 = vmul.f32 %v2747_v56, %v1379_v60 }
0x1cec   :  { %v1384_v57 = vpop.permute.xlu1 %1383 }
0x1ced   :  { %v1386_v59 = vmul.f32 %v2747_v56, %v1384_v57 }
0x1cef   :  { %1388 = vrot.lane.b32.xlu0 %v1386_v59, %s2818_s3 }
0x1d61   :  { %v1389_v62 = vpop.permute.xlu0 %1388 }
0x1d62   :  { %v1391_v63 = vadd.f32 %v1389_v62, %v1381_v6 }
0x1d64   :  { %2748 = vtanh.f32 %v1391_v63  ;;  %v1486_v24 = vrot.slane %v1391_v63, 6 }
0x1d6e   :  { %v2749_v9 = vpop.eup %2748 }
0x1d6f   :  { %1394 = vrot.lane.b32.xlu1 %v2749_v9, %s2817_s30 }
0x1de1   :  { %v1395_v1 = vpop.permute.xlu1 %1394 }
0x1de2   :  { %v1397_v2 = vmul.f32 %v2747_v56, %v1395_v1 }
0x1de4   :  { %v1399_v3 = vrot.slane %v1397_v2, 4 }
0x1de6   :  { %1400 = vrot.lane.b32.xlu0 %v1399_v3, %s2818_s3 }
0x1e58   :  { %v1401_v4 = vpop.permute.xlu0 %1400 }
0x1e59   :  { %2430 = vmatmul.mubr.msk.f32.vlgmr.msra.gmra.mrb[8].mxu1 %vm139_vm3, %v1401_v4 }
0x1e5a   :  { %2610 = vmatpush3.bf16.msra.mxu1 %v3047_v58  ;;  %2451 = vmatprep.mubr.msk.f32.mxu1 %vm2815_vm2, %v2816_v10 }
0x1e5b   :  { %2611 = vmatprep.subr.bf16.mxu1 %v2814_v8 }
0x1e5e   :  { %2613 = vmatpush3.bf16.msra.mxu1 %v3056_v61 }
0x1e5f   :  { %2620 = vmatprep.subr.bf16.mxu1 %v2814_v8 }
0x1f2c   :  { %v1470_v5 = vpop.f32.mrb[8].mxu1 }
0x1f2d   :  { %v1475_v11 = vrot.slane %v1470_v5, 2  ;;  %v2431_v14 = vpop.f32.mrb[9].mxu1 }
0x1f2f   :  { %v1477_v16 = vadd.f32 %v1475_v11, %v3087_v12 }
0x1f31   :  { %2750 = vtanh.f32 %v1477_v16  ;;  %v2161_v18 = vmul.f32 -1.442695, %v1477_v16 }
0x1f33   :  { %2752 = vpow2.f32 %v2161_v18 }
0x1f3b   :  { %v2751_v17 = vpop.eup %2750 }
0x1f3c   :  { %1490 = vrot.lane.b32.xlu1 %v2751_v17, %s2817_s30 }
0x1f3d   :  { %v2753_v19 = vpop.eup %2752 }
0x1f3e   :  { %v1481_v20 = vadd.f32 1.0, %v2753_v19 }
0x1f40   :  { %2754 = vrcp.f32 %v1481_v20 }
0x1f4a   :  { %v2755_v21 = vpop.eup %2754 }
0x1f4b   :  { %v1488_v25 = vmul.f32 %v2755_v21, %v1486_v24 }
0x1fae   :  { %v1491_v22 = vpop.permute.xlu1 %1490 }
0x1faf   :  { %v1493_v23 = vmul.f32 %v2755_v21, %v1491_v22 }
0x1fb1   :  { %1495 = vrot.lane.b32.xlu0 %v1493_v23, %s2818_s3 }
0x2023   :  { %v1496_v26 = vpop.permute.xlu0 %1495 }
0x2024   :  { %v1498_v27 = vadd.f32 %v1496_v26, %v1488_v25 }
0x2026   :  { %2756 = vtanh.f32 %v1498_v27  ;;  %v1590_v42 = vrot.slane %v1498_v27, 6 }
0x2030   :  { %v2757_v12 = vpop.eup %2756 }
0x2031   :  { %1501 = vrot.lane.b32.xlu1 %v2757_v12, %s2817_s30 }
0x20a3   :  { %v1502_v28 = vpop.permute.xlu1 %1501 }
0x20a4   :  { %v1504_v29 = vmul.f32 %v2755_v21, %v1502_v28 }
0x20a6   :  { %v1506_v30 = vrot.slane %v1504_v29, 6 }
0x20a8   :  { %1507 = vrot.lane.b32.xlu0 %v1506_v30, %s2818_s3 }
0x211a   :  { %v1508_v31 = vpop.permute.xlu0 %1507 }
0x211b   :  { %2441 = vmatmul.mubr.msk.f32.vlgmr.msra.gmra.mrb[18].mxu0 %vm139_vm3, %v1508_v31 }
0x211c   :  { %2616 = vmatpush3.bf16.msra.mxu0 %v3047_v58  ;;  %2462 = vmatprep.mubr.msk.f32.mxu0 %vm2815_vm2, %v2816_v10 }
0x211d   :  { %2617 = vmatprep.subr.bf16.mxu0 %v2814_v8 }
0x2120   :  { %2619 = vmatpush3.bf16.msra.mxu0 %v3056_v61 }
0x2121   :  { %2626 = vmatprep.subr.bf16.mxu0 %v2814_v8 }
0x21ee   :  { %v1577_v15 = vpop.f32.mrb[18].mxu0 }
0x21ef   :  { %v1581_v32 = vadd.f32 %v1577_v15, %v3085_v7  ;;  %v2442_v33 = vpop.f32.mrb[19].mxu0 }
0x21f1   :  { %2758 = vtanh.f32 %v1581_v32  ;;  %v2163_v36 = vmul.f32 -1.442695, %v1581_v32 }
0x21f3   :  { %2760 = vpow2.f32 %v2163_v36 }
0x21fb   :  { %v2759_v34 = vpop.eup %2758 }
0x21fc   :  { %1594 = vrot.lane.b32.xlu1 %v2759_v34, %s2817_s30 }
0x21fd   :  { %v2761_v37 = vpop.eup %2760 }
0x21fe   :  { %v1585_v38 = vadd.f32 1.0, %v2761_v37 }
0x2200   :  { %2762 = vrcp.f32 %v1585_v38 }
0x220a   :  { %v2763_v39 = vpop.eup %2762 }
0x220b   :  { %v1592_v43 = vmul.f32 %v2763_v39, %v1590_v42 }
0x226e   :  { %v1595_v40 = vpop.permute.xlu1 %1594 }
0x226f   :  { %v1597_v41 = vmul.f32 %v2763_v39, %v1595_v40 }
0x2271   :  { %1599 = vrot.lane.b32.xlu0 %v1597_v41, %s2818_s3 }
0x22e3   :  { %v1600_v44 = vpop.permute.xlu0 %1599 }
0x22e4   :  { %v1602_v45 = vadd.f32 %v1600_v44, %v1592_v43  ;;  %v1938_v44 = vld [vmem:[%s3266_s7 + $0x8] sm:$0xff] }
0x22e6   :  { %2764 = vtanh.f32 %v1602_v45 }
0x22f0   :  { %v2765_v46 = vpop.eup %2764 }
0x22f1   :  { %1605 = vrot.lane.b32.xlu1 %v2765_v46, %s2817_s30 }
0x2363   :  { %v1606_v47 = vpop.permute.xlu1 %1605 }
0x2364   :  { %v1608_v48 = vmul.f32 %v2763_v39, %v1606_v47  ;;  %v1940_v47 = vld [vmem:[%s3266_s7 + $0x18] sm:$0xff] }
0x2366   :  { %1610 = vrot.lane.b32.xlu0 %v1608_v48, %s2818_s3 }
0x23d8   :  { %v1611_v49 = vpop.permute.xlu0 %1610 }
0x23d9   :  { %2452 = vmatmul.mubr.msk.f32.vlgmr.msra.gmra.mrb[10].mxu1 %vm139_vm3, %v1611_v49 }
0x23da   :  { %2622 = vmatpush3.bf16.msra.mxu1 %v3047_v58  ;;  %2473 = vmatprep.mubr.msk.f32.mxu1 %vm2815_vm2, %v2816_v10 }
0x23db   :  { %2623 = vmatprep.subr.bf16.mxu1 %v2814_v8 }
0x23de   :  { %2625 = vmatpush3.bf16.msra.mxu1 %v3056_v61  ;;  %v1696_v61 = vrot.slane %v1602_v45, 6  ;;  %v1939_v45 = vld [vmem:[%s3266_s7 + $0x10] sm:$0xff] }
0x23df   :  { %2632 = vmatprep.subr.bf16.mxu1 %v2814_v8  ;;  %v2630_v48 = vpack.c.bf16 %v1940_v47, %v1939_v45 }
0x24ac   :  { %v1680_v13 = vpop.f32.mrb[10].mxu1 }
0x24ad   :  { %v1685_v50 = vrot.slane %v1680_v13, 6  ;;  %v2453_v51 = vpop.f32.mrb[11].mxu1  ;;  %v2024_v13 = vld [vmem:[%s3268_s9] sm:$0xff] }
0x24ae   :  { %v2026_v51 = vld [vmem:[%s3268_s9 + $0x10] sm:$0xff] }
0x24af   :  { %v1687_v52 = vadd.f32 %v1685_v50, %v3085_v7  ;;  %v2025_v50 = vld [vmem:[%s3268_s9 + $0x8] sm:$0xff] }
0x24b1   :  { %2766 = vtanh.f32 %v1687_v52  ;;  %v2165_v54 = vmul.f32 -1.442695, %v1687_v52  ;;  %v2633_v52 = vpack.c.bf16 %v2025_v50, %v2024_v13 }
0x24b3   :  { %2768 = vpow2.f32 %v2165_v54 }
0x24bb   :  { %v2767_v53 = vpop.eup %2766 }
0x24bc   :  { %1700 = vrot.lane.b32.xlu1 %v2767_v53, %s2817_s30  ;;  %v2027_v53 = vld [vmem:[%s3268_s9 + $0x18] sm:$0xff] }
0x24bd   :  { %v2769_v58 = vpop.eup %2768  ;;  %v2636_v54 = vpack.c.bf16 %v2027_v53, %v2026_v51 }
0x24be   :  { %v1691_v35 = vadd.f32 1.0, %v2769_v58  ;;  %v2028_v58 = vld [vmem:[%s3268_s9 + $0x20] sm:$0xff] }
0x24c0   :  { %2770 = vrcp.f32 %v1691_v35  ;;  %v2029_v35 = vld [vmem:[%s3268_s9 + $0x28] sm:$0xff] }
0x24ca   :  { %v2771_v55 = vpop.eup %2770 }
0x24cb   :  { %v1698_v59 = vmul.f32 %v2771_v55, %v1696_v61  ;;  %v1930_v61 = vrot.slane %v3070_v0, 6  ;;  %v2032_v0 = vld [vmem:[%s3268_s9 + $0x40] sm:$0xff] }
0x252e   :  { %v1701_v56 = vpop.permute.xlu1 %1700 }
0x252f   :  { %v1703_v57 = vmul.f32 %v2771_v55, %v1701_v56 }
0x2531   :  { %1705 = vrot.lane.b32.xlu0 %v1703_v57, %s2818_s3  ;;  %v2639_v57 = vpack.c.bf16 %v2029_v35, %v2028_v58 }
0x25a3   :  { %v1706_v60 = vpop.permute.xlu0 %1705 }
0x25a4   :  { %v1708_v6 = vadd.f32 %v1706_v60, %v1698_v59  ;;  %v2030_v60 = vld [vmem:[%s3268_s9 + $0x30] sm:$0xff] }
0x25a6   :  { %2772 = vtanh.f32 %v1708_v6  ;;  %v1803_v22 = vrot.slane %v1708_v6, 6  ;;  %v2031_v6 = vld [vmem:[%s3268_s9 + $0x38] sm:$0xff] }
0x25b0   :  { %v2773_v62 = vpop.eup %2772 }
0x25b1   :  { %1711 = vrot.lane.b32.xlu1 %v2773_v62, %s2817_s30 }
0x2623   :  { %v1712_v63 = vpop.permute.xlu1 %1711 }
0x2624   :  { %v1714_v9 = vmul.f32 %v2771_v55, %v1712_v63 }
0x2626   :  { %v1716_v1 = vrot.slane %v1714_v9, 2  ;;  %v2642_v9 = vpack.c.bf16 %v2031_v6, %v2030_v60 }
0x2628   :  { %1717 = vrot.lane.b32.xlu0 %v1716_v1, %s2818_s3  ;;  %v2033_v1 = vld [vmem:[%s3268_s9 + $0x48] sm:$0xff] }
0x269a   :  { %v1718_v2 = vpop.permute.xlu0 %1717 }
0x269b   :  { %2463 = vmatmul.mubr.msk.f32.vlgmr.msra.gmra.mrb[20].mxu0 %vm139_vm3, %v1718_v2  ;;  %v2645_v2 = vpack.c.bf16 %v2033_v1, %v2032_v0 }
0x269c   :  { %2484 = vmatprep.mubr.msk.f32.mxu0 %vm2815_vm2, %v2816_v10 }
0x276e   :  { %v1787_v3 = vpop.f32.mrb[20].mxu0 }
0x276f   :  { %v1792_v4 = vrot.slane %v1787_v3, 4  ;;  %v2464_v5 = vpop.f32.mrb[21].mxu0  ;;  %v2034_v3 = vld [vmem:[%s3268_s9 + $0x50] sm:$0xff] }
0x2771   :  { %v1794_v11 = vadd.f32 %v1792_v4, %v3085_v7  ;;  %v2035_v4 = vld [vmem:[%s3268_s9 + $0x58] sm:$0xff] }
0x2772   :  { %v2648_v5 = vpack.c.bf16 %v2035_v4, %v2034_v3 }
0x2773   :  { %2774 = vtanh.f32 %v1794_v11  ;;  %v2167_v16 = vmul.f32 -1.442695, %v1794_v11  ;;  %v2036_v11 = vld [vmem:[%s3268_s9 + $0x60] sm:$0xff] }
0x2775   :  { %2776 = vpow2.f32 %v2167_v16 }
0x277d   :  { %v2775_v14 = vpop.eup %2774 }
0x277e   :  { %1807 = vrot.lane.b32.xlu1 %v2775_v14, %s2817_s30  ;;  %v2037_v14 = vld [vmem:[%s3268_s9 + $0x68] sm:$0xff] }
0x277f   :  { %v2777_v17 = vpop.eup %2776  ;;  %v2651_v16 = vpack.c.bf16 %v2037_v14, %v2036_v11 }
0x2780   :  { %v1798_v18 = vadd.f32 1.0, %v2777_v17 }
0x2782   :  { %2778 = vrcp.f32 %v1798_v18  ;;  %v2038_v18 = vld [vmem:[%s3268_s9 + $0x70] sm:$0xff] }
0x278c   :  { %v2779_v19 = vpop.eup %2778 }
0x278d   :  { %v1805_v23 = vmul.f32 %v2779_v19, %v1803_v22 }
0x27f0   :  { %v1808_v20 = vpop.permute.xlu1 %1807 }
0x27f1   :  { %v1810_v21 = vmul.f32 %v2779_v19, %v1808_v20 }
0x27f3   :  { %1812 = vrot.lane.b32.xlu0 %v1810_v21, %s2818_s3  ;;  %v2170_v21 = vld [vmem:[%s3267_s8] ss:$0 sm:$0xff] }
0x2865   :  { %v1813_v24 = vpop.permute.xlu0 %1812 }
0x2866   :  { %v1815_v25 = vadd.f32 %v1813_v24, %v1805_v23 }
0x2868   :  { %2780 = vtanh.f32 %v1815_v25 }
0x2872   :  { %v2781_v26 = vpop.eup %2780 }
0x2873   :  { %1818 = vrot.lane.b32.xlu1 %v2781_v26, %s2817_s30 }
0x28e5   :  { %v1819_v27 = vpop.permute.xlu1 %1818 }
0x28e6   :  { %v1821_v12 = vmul.f32 %v2779_v19, %v1819_v27  ;;  %v2039_v19 = vld [vmem:[%s3268_s9 + $0x78] sm:$0xff]  ;;  %s2790_s9 = scalar_lea.vmem %s2126_s22, 64 }
0x28e7   :  { %v2654_v20 = vpack.c.bf16 %v2039_v19, %v2038_v18  ;;  %p2791_p0 = scmp.ne.s32.totalorder %s2126_s22, %s2790_s9  ;;  %p2796_p2 = scmp.lt.s32.totalorder %s2790_s9, %s2790_s9 }
0x28e8   :  { %v1823_v28 = vrot.slane %v1821_v12, 4 }
0x28e9   :  { %p2797_p3 = por %p2796_p2, %p2795_p1 }
0x28ea   :  { %1824 = vrot.lane.b32.xlu0 %v1823_v28, %s2818_s3 }
0x28eb   :  { %p2798_p4 = pnand %p2797_p3, %p2791_p0 }
0x295c   :  { %v1825_v29 = vpop.permute.xlu0 %1824 }
0x295d   :  { %2474 = vmatmul.mubr.msk.f32.vlgmr.msra.gmra.mrb[12].mxu1 %vm139_vm3, %v1825_v29 }
0x295e   :  { %2519 = vmatprep.mubr.msk.f32.mxu1 %vm2815_vm2, %v2816_v10  ;;  %v1910_v10 = vrot.slane %v1815_v25, 6  ;;  %2634 = vmatpush3.bf16.msra.mxu1 %v2633_v52  ;;  %v2172_v25 = vld [vmem:[%s3269_s10] ss:$0 sm:$0xff] }
0x295f   :  { %2635 = vmatprep.subr.bf16.mxu1 %v2814_v8 }
0x2962   :  { %2637 = vmatpush3.bf16.msra.mxu1 %v2636_v54 }
0x2963   :  { %2638 = vmatprep.subr.bf16.mxu1 %v2814_v8 }
0x2966   :  { %2640 = vmatpush3.bf16.msra.mxu1 %v2639_v57 }
0x2967   :  { %2641 = vmatprep.subr.bf16.mxu1 %v2814_v8 }
0x296a   :  { %2643 = vmatpush3.bf16.msra.mxu1 %v2642_v9 }
0x296b   :  { %2644 = vmatprep.subr.bf16.mxu1 %v2814_v8 }
0x296e   :  { %2646 = vmatpush3.bf16.msra.mxu1 %v2645_v2 }
0x296f   :  { %2647 = vmatprep.subr.bf16.mxu1 %v2814_v8 }
0x2972   :  { %2649 = vmatpush3.bf16.msra.mxu1 %v2648_v5 }
0x2973   :  { %2650 = vmatprep.subr.bf16.mxu1 %v2814_v8 }
0x2976   :  { %2652 = vmatpush3.bf16.msra.mxu1 %v2651_v16 }
0x2977   :  { %2653 = vmatprep.subr.bf16.mxu1 %v2814_v8 }
0x297a   :  { %2655 = vmatpush3.bf16.msra.mxu1 %v2654_v20 }
0x2a30   :  { %v1894_v30 = vpop.f32.mrb[12].mxu1 }
0x2a31   :  { %v1899_v31 = vrot.slane %v1894_v30, 2  ;;  %v2475_v15 = vpop.f32.mrb[13].mxu1 }
0x2a33   :  { %v1901_v32 = vadd.f32 %v1899_v31, %v3085_v7  ;;  %v1937_v7 = vld [vmem:[%s3266_s7] sm:$0xff] }
0x2a34   :  { %v2627_v46 = vpack.c.bf16 %v1938_v44, %v1937_v7 }
0x2a35   :  { %2782 = vtanh.f32 %v1901_v32  ;;  %v2169_v34 = vmul.f32 -1.442695, %v1901_v32 }
0x2a36   :  { %2628 = vmatpush3.bf16.msra.mxu0 %v2627_v46 }
0x2a37   :  { %2784 = vpow2.f32 %v2169_v34  ;;  %2629 = vmatprep.subr.bf16.mxu0 %v2814_v8 }
0x2a3a   :  { %2631 = vmatpush3.bf16.msra.mxu0 %v2630_v48 }
0x2a3f   :  { %v2783_v33 = vpop.eup %2782 }
0x2a40   :  { %1914 = vrot.lane.b32.xlu1 %v2783_v33, %s2817_s30 }
0x2a41   :  { %v2785_v36 = vpop.eup %2784 }
0x2a42   :  { %v1905_v37 = vadd.f32 1.0, %v2785_v36 }
0x2a44   :  { %2786 = vrcp.f32 %v1905_v37 }
0x2a4e   :  { %v2787_v38 = vpop.eup %2786 }
0x2a4f   :  { %v1912_v41 = vmul.f32 %v2787_v38, %v1910_v10 }
0x2ab2   :  { %v1915_v39 = vpop.permute.xlu1 %1914 }
0x2ab3   :  { %v1917_v40 = vmul.f32 %v2787_v38, %v1915_v39 }
0x2ab5   :  { %1919 = vrot.lane.b32.xlu0 %v1917_v40, %s2818_s3 }
0x2b27   :  { %v1920_v42 = vpop.permute.xlu0 %1919 }
0x2b28   :  { %v1922_v43 = vadd.f32 %v1920_v42, %v1912_v41 }
0x2b2a   :  { %2788 = vtanh.f32 %v1922_v43 }
0x2b34   :  { %v2789_v49 = vpop.eup %2788 }
0x2b35   :  { %1925 = vrot.lane.b32.xlu1 %v2789_v49, %s2817_s30 }
0x2ba7   :  { %v1926_v55 = vpop.permute.xlu1 %1925 }
0x2ba8   :  { %v1928_v56 = vmul.f32 %v2787_v38, %v1926_v55 }
0x2baa   :  { %v1933_v59 = vrot.slane %v1928_v56, 4 }
0x2bac   :  { %v1935_v62 = vsel %vm982_vm4, %v1930_v61, %v1933_v59 }
0x2bad   :  { %v1936_v63 = vmax.f32 %v1935_v62, 0.0 }
0x2baf   :  { %1949 = vrot.lane.b32.xlu0 %v1936_v63, %s2818_s3 }
0x2c21   :  { %v1950_v17 = vpop.permute.xlu0 %1949 }
0x2c22   :  { %2485 = vmatmul.mubr.msk.f32.vlgmr.msra.gmra.mrb[22].mxu0 %vm139_vm3, %v1950_v17 }
0x2cf5   :  { %v2019_v22 = vpop.f32.mrb[22].mxu0 }
0x2cf6   :  { %v2020_v23 = vadd.f32 %v2170_v21, %v2019_v22  ;;  %v2486_v8 = vpop.f32.mrb[23].mxu0 }
0x2cf8   :  { %v2023_v24 = vmax.f32 %v2020_v23, 0.0 }
0x2cfa   :  { %2520 = vmatmul.mubr.f32.vlgmr.msra.gmra.mrb[14].mxu1 %v2023_v24 }
0x2dcd   :  { %v2113_v26 = vpop.f32.mrb[14].mxu1 }
0x2dce   :  { %v2114_v27 = vadd.f32 %v2172_v25, %v2113_v26  ;;  %v2521_v12 = vpop.f32.mrb[15].mxu1 }
0x2dd0   :  { %2118 = vst.msk [vmem:[#allocation2] sm:$0xf] %vm2117_vm6, %v2114_v27 }
0x2dd1   :  { %2801 = shalt.err (!%p2798_p4)
}
0x2dd2   :  { %s2802_s24 = scalar_lea.hbm %s3270_s11, 64 }
0x2dd3   :  { %p2803_p5 = scmp.ne.s32.totalorder %s3270_s11, %s2802_s24  ;;  %p2806_p6 = scmp.lt.u32.totalorder %s2802_s24, %s3270_s11 }
0x2dd5   :  { %p2808_p7 = pnand %p2806_p6, %p2803_p5 }
0x2dd7   :  { %2811 = shalt.err (!%p2808_p7)
}
0x2dd8   :  { %2128 = dma.vmem_to_hbm [thread:$0]  %s2126_s22, 64, %s3270_s11, [#allocation3]  }
0x2dd9   :  { %2812 = dma.done.wait [#allocation3], 64  }
0x2dda   :  { %2813 = vsyncadd [#allocation3], 4294967232 }
0x2ddb   :  { %2132 = vsyncpa [#allocation3], 1 }

</bundles_post_ra>
